<compile_context>
chip_gen: v5e
topology: v5e:2x2
jax: 0.10.0
libtpu: 0.0.40
codegen_flags: <defaults>
</compile_context>

<pallas_src>
import math

import jax
import jax.numpy as jnp
from jax import lax
from jax.experimental import pallas as pl
from jax.experimental.pallas import tpu as pltpu

# Module constants (d_model // num_heads = head_dim, as in the PyTorch module).
CONTEXT_LENGTH = 128
D_MODEL = 512
NUM_HEADS = 8
HEAD_DIM = D_MODEL // NUM_HEADS   # 64
DROPOUT_P = 0.1                   # nn.Dropout — identity in eval mode


def _attention_kernel(x_ref, wqkv_ref, o_ref, q_s, k_s, v_s):
    """One block of BB batch rows per grid step.

    x_ref:    (BB, T, C)   bf16  VMEM   (input pre-cast in the wrapper)
    wqkv_ref: (C, 3*H)     bf16  VMEM   fused [Wq/sqrt(H) | Wk | Wv], shared
    o_ref:    (BB, T, H)   f32   VMEM
    q_s/k_s/v_s: (BB, T, H) bf16 VMEM scratch (lane-aligned per-tensor slabs)
    """
    BB, T, C = x_ref.shape
    H = o_ref.shape[-1]

    # --- Fused QKV projection: single (BB*T, C) x (C, 3H) bf16 MXU pass. ---
    x2d = x_ref[...].reshape(BB * T, C)                      # free reshape (leading dims)
    qkv = jnp.dot(x2d, wqkv_ref[...],
                  preferred_element_type=jnp.float32)        # (BB*T, 3H) f32

    # Split once (outside the per-row hot loop) into lane-aligned bf16 slabs.
    q_s[...] = qkv[:, 0:H].astype(jnp.bfloat16).reshape(BB, T, H)
    k_s[...] = qkv[:, H:2 * H].astype(jnp.bfloat16).reshape(BB, T, H)
    v_s[...] = qkv[:, 2 * H:3 * H].astype(jnp.bfloat16).reshape(BB, T, H)

    # Causal mask (== tril(ones(T, T)) registered buffer).
    row = lax.broadcasted_iota(jnp.int32, (T, T), 0)
    col = lax.broadcasted_iota(jnp.int32, (T, T), 1)
    causal = col <= row

    # Per-row attention; NOT unrolled (keeps vreg pressure of the (T,T) f32
    # intermediates bounded to one row at a time -> no spill traffic).
    @pl.loop(0, BB)
    def _(b):
        q = q_s[b]                                           # (T, H) bf16
        k = k_s[b]                                           # (T, H) bf16
        v = v_s[b]                                           # (T, H) bf16

        # Q @ K^T without materializing a transpose (contract last dims).
        # 1/sqrt(H) score scale already folded into the Wq columns.
        scores = lax.dot_general(
            q, k, dimension_numbers=(((1,), (1,)), ((), ())),
            preferred_element_type=jnp.float32)              # (T, T) f32

        scores = jnp.where(causal, scores, -jnp.inf)

        # Numerically-stable softmax in f32 (diagonal never masked -> no NaN).
        m = jnp.max(scores, axis=-1, keepdims=True)
        p = jnp.exp(scores - m)
        denom = jnp.sum(p, axis=-1, keepdims=True)
        weights = p * pl.reciprocal(denom, approx=True)      # (T, T) f32

        # TODO(synk): nn.Dropout(0.1) on the attention weights is a no-op in
        # eval mode; training-mode stochastic dropout is not applied here.

        out = jnp.dot(weights.astype(jnp.bfloat16), v,
                      preferred_element_type=jnp.float32)    # (T, H) f32
        o_ref[b] = out.astype(o_ref.dtype)


def attention_forward(x, wq, wk, wv, *, block_b=16):
    """x: (B, T, C) f32; wq/wk/wv: (C, H) f32 -> (B, T, H) f32.

    block_b: batch rows per grid step. 16-32 is a good range for real
    workloads (per-step VMEM is only ~6 MiB at bb=16 with bf16 inputs, well
    under every generation's scoped limit); pick it so the grid length stays
    an even number >= 2 so v7x's two TensorCores both get work.
    """
    B, T, C = x.shape
    H = wq.shape[1]
    assert T <= CONTEXT_LENGTH and C == D_MODEL and H == HEAD_DIM

    # Fuse the three projection weights, fold the 1/sqrt(H) score scale into
    # the Wq columns, and pre-cast to bf16 (MXU operands; f32 accumulation).
    scale = 1.0 / math.sqrt(H)
    wqkv = jnp.concatenate([wq * scale, wk, wv], axis=1).astype(jnp.bfloat16)

    # Pre-cast x to bf16 in the wrapper: halves the dominant HBM stream.
    xb = x.astype(jnp.bfloat16)

    bb = max(1, min(block_b, B))
    pad = (-B) % bb
    if pad:
        xb = jnp.concatenate([xb, jnp.zeros((pad, T, C), xb.dtype)], axis=0)
    Bp = B + pad

    out = pl.pallas_call(
        _attention_kernel,
        out_shape=jax.ShapeDtypeStruct((Bp, T, H), jnp.float32),
        grid_spec=pltpu.PrefetchScalarGridSpec(
            num_scalar_prefetch=0,
            grid=(Bp // bb,),
            in_specs=[
                pl.BlockSpec((bb, T, C), lambda b: (b, 0, 0)),     # x slab (bf16)
                pl.BlockSpec((C, 3 * H), lambda b: (0, 0)),        # fused Wqkv
            ],
            out_specs=pl.BlockSpec((bb, T, H), lambda b: (b, 0, 0)),
            scratch_shapes=[
                pltpu.VMEM((bb, T, H), jnp.bfloat16),              # Q
                pltpu.VMEM((bb, T, H), jnp.bfloat16),              # K
                pltpu.VMEM((bb, T, H), jnp.bfloat16),              # V
            ],
        ),
        compiler_params=pltpu.CompilerParams(
            dimension_semantics=("parallel",),
        ),
    )(xb, wqkv)
    return out[:B]


def attention_reference(x, wq, wk, wv):
    """Pure-JAX f32 reference mirroring the PyTorch forward (eval dropout)."""
    B, T, C = x.shape
    q = x @ wq
    k = x @ wk
    v = x @ wv
    w = (q @ jnp.swapaxes(k, -2, -1)) / math.sqrt(HEAD_DIM)
    mask = jnp.tril(jnp.ones((T, T), dtype=bool))
    w = jnp.where(mask, w, -jnp.inf)
    w = jax.nn.softmax(w, axis=-1)
    return w @ v


if __name__ == "__main__":
    key = jax.random.PRNGKey(0)
    kx, kq, kk, kv = jax.random.split(key, 4)

    B, T = 4, CONTEXT_LENGTH                  # small batch, T = context_length
    x = jax.random.normal(kx, (B, T, D_MODEL), dtype=jnp.float32)

    # Deterministic "Linear(d_model, head_dim, bias=False)" weights,
    # stored as (d_model, head_dim) so the kernel applies x @ W.
    bound = 1.0 / math.sqrt(D_MODEL)
    wq = jax.random.uniform(kq, (D_MODEL, HEAD_DIM), jnp.float32, -bound, bound)
    wk = jax.random.uniform(kk, (D_MODEL, HEAD_DIM), jnp.float32, -bound, bound)
    wv = jax.random.uniform(kv, (D_MODEL, HEAD_DIM), jnp.float32, -bound, bound)

    # block_b=2 -> grid=(2,): two even 'parallel' steps (keeps v7x's 2 TCs busy).
    out = attention_forward(x, wq, wk, wv, block_b=2)
    out = jax.block_until_ready(out)

    ref = attention_reference(x, wq, wk, wv)
    assert out.shape == (B, T, HEAD_DIM)
    # bf16 x / bf16 MXU operands with f32 accumulation -> loosened tolerance.
    assert jnp.allclose(out, ref, atol=5e-2, rtol=5e-2), "mismatch vs reference"

    print("KERNEL_OK")
</pallas_src>

<mosaic_0001>
module attributes {stable_mosaic.version = 11 : i64} {
  func.func @_attention_kernel(%arg0: i32, %arg1: memref<2x128x512xbf16, #tpu.memory_space<vmem>>, %arg2: memref<512x192xbf16, #tpu.memory_space<vmem>>, %arg3: memref<2x128x64xf32, #tpu.memory_space<vmem>>, %arg4: memref<2x128x64xbf16, #tpu.memory_space<vmem>>, %arg5: memref<2x128x64xbf16, #tpu.memory_space<vmem>>, %arg6: memref<2x128x64xbf16, #tpu.memory_space<vmem>>) attributes {dimension_semantics = [#tpu.dimension_semantics<parallel>], iteration_bounds = array<i64: 2>, scalar_prefetch = 0 : i64, scratch_operands = 3 : i64, tpu.core_type = #tpu.core_type<tc>, window_params = [{transform_indices = @transform_0, window_bounds = array<i64: 2, 128, 512>}, {pipeline_mode = #tpu.pipeline_mode<synchronous>, transform_indices = @transform_1, window_bounds = array<i64: 512, 192>}, {transform_indices = @transform_2, window_bounds = array<i64: 2, 128, 64>}]} {
    %c0 = arith.constant 0 : index
    %c0_0 = arith.constant 0 : index
    %c0_1 = arith.constant 0 : index
    %0 = vector.load %arg1[%c0, %c0_0, %c0_1] : memref<2x128x512xbf16, #tpu.memory_space<vmem>>, vector<2x128x512xbf16>
    %1 = vector.shape_cast %0 : vector<2x128x512xbf16> to vector<256x512xbf16>
    %c0_2 = arith.constant 0 : index
    %c0_3 = arith.constant 0 : index
    %2 = vector.load %arg2[%c0_2, %c0_3] : memref<512x192xbf16, #tpu.memory_space<vmem>>, vector<512x192xbf16>
    %cst = arith.constant dense<0.000000e+00> : vector<256x192xf32>
    %3 = tpu.matmul %1, %2, %cst {dimension_numbers = #tpu.dot_dimension_numbers<[1], [0], [0], [1], [0, 0, 1, 1], [], []>} : vector<256x512xbf16>, vector<512x192xbf16>, vector<256x192xf32> -> vector<256x192xf32>
    %4 = vector.extract_strided_slice %3 {offsets = [0, 0], sizes = [256, 64], strides = [1, 1]} : vector<256x192xf32> to vector<256x64xf32>
    %5 = arith.truncf %4 : vector<256x64xf32> to vector<256x64xbf16>
    %6 = vector.shape_cast %5 : vector<256x64xbf16> to vector<2x128x64xbf16>
    %c0_4 = arith.constant 0 : index
    %c0_5 = arith.constant 0 : index
    %c0_6 = arith.constant 0 : index
    %7 = vector.load %arg4[%c0_4, %c0_5, %c0_6] : memref<2x128x64xbf16, #tpu.memory_space<vmem>>, vector<2x128x64xbf16>
    tpu.vector_store %arg4[%c0_4, %c0_5, %c0_6], %6 {strides = array<i32>} : memref<2x128x64xbf16, #tpu.memory_space<vmem>>, vector<2x128x64xbf16>,
    %8 = vector.extract_strided_slice %3 {offsets = [0, 64], sizes = [256, 64], strides = [1, 1]} : vector<256x192xf32> to vector<256x64xf32>
    %9 = arith.truncf %8 : vector<256x64xf32> to vector<256x64xbf16>
    %10 = vector.shape_cast %9 : vector<256x64xbf16> to vector<2x128x64xbf16>
    %c0_7 = arith.constant 0 : index
    %c0_8 = arith.constant 0 : index
    %c0_9 = arith.constant 0 : index
    %11 = vector.load %arg5[%c0_7, %c0_8, %c0_9] : memref<2x128x64xbf16, #tpu.memory_space<vmem>>, vector<2x128x64xbf16>
    tpu.vector_store %arg5[%c0_7, %c0_8, %c0_9], %10 {strides = array<i32>} : memref<2x128x64xbf16, #tpu.memory_space<vmem>>, vector<2x128x64xbf16>,
    %12 = vector.extract_strided_slice %3 {offsets = [0, 128], sizes = [256, 64], strides = [1, 1]} : vector<256x192xf32> to vector<256x64xf32>
    %13 = arith.truncf %12 : vector<256x64xf32> to vector<256x64xbf16>
    %14 = vector.shape_cast %13 : vector<256x64xbf16> to vector<2x128x64xbf16>
    %c0_10 = arith.constant 0 : index
    %c0_11 = arith.constant 0 : index
    %c0_12 = arith.constant 0 : index
    %15 = vector.load %arg6[%c0_10, %c0_11, %c0_12] : memref<2x128x64xbf16, #tpu.memory_space<vmem>>, vector<2x128x64xbf16>
    tpu.vector_store %arg6[%c0_10, %c0_11, %c0_12], %14 {strides = array<i32>} : memref<2x128x64xbf16, #tpu.memory_space<vmem>>, vector<2x128x64xbf16>,
    %16 = tpu.iota {dimensions = array<i32: 0>} : vector<128x128xi32>
    %17 = tpu.iota {dimensions = array<i32: 1>} : vector<128x128xi32>
    %18 = arith.cmpi sle, %17, %16 : vector<128x128xi32>
    %c0_i32 = arith.constant 0 : i32
    %c2_i32 = arith.constant 2 : i32
    %19 = arith.addi %c0_i32, %c2_i32 : i32
    %c1_i32 = arith.constant 1 : i32
    scf.for %arg7 = %c0_i32 to %19 step %c1_i32  : i32 {
      %c1_i32_14 = arith.constant 1 : i32
      %20 = arith.muli %arg7, %c1_i32_14 : i32
      %c0_i32_15 = arith.constant 0 : i32
      %21 = arith.addi %c0_i32_15, %20 : i32
      %22 = arith.index_cast %21 : i32 to index
      %c0_16 = arith.constant 0 : index
      %c0_17 = arith.constant 0 : index
      %23 = vector.load %arg4[%22, %c0_16, %c0_17] : memref<2x128x64xbf16, #tpu.memory_space<vmem>>, vector<1x128x64xbf16>
      %24 = vector.shape_cast %23 : vector<1x128x64xbf16> to vector<128x64xbf16>
      %25 = arith.index_cast %21 : i32 to index
      %c0_18 = arith.constant 0 : index
      %c0_19 = arith.constant 0 : index
      %26 = vector.load %arg5[%25, %c0_18, %c0_19] : memref<2x128x64xbf16, #tpu.memory_space<vmem>>, vector<1x128x64xbf16>
      %27 = vector.shape_cast %26 : vector<1x128x64xbf16> to vector<128x64xbf16>
      %28 = arith.index_cast %21 : i32 to index
      %c0_20 = arith.constant 0 : index
      %c0_21 = arith.constant 0 : index
      %29 = vector.load %arg6[%28, %c0_20, %c0_21] : memref<2x128x64xbf16, #tpu.memory_space<vmem>>, vector<1x128x64xbf16>
      %30 = vector.shape_cast %29 : vector<1x128x64xbf16> to vector<128x64xbf16>
      %cst_22 = arith.constant dense<0.000000e+00> : vector<128x128xf32>
      %31 = tpu.matmul %24, %27, %cst_22 {dimension_numbers = #tpu.dot_dimension_numbers<[1], [1], [0], [0], [0, 0, 1, 0], [], []>} : vector<128x64xbf16>, vector<128x64xbf16>, vector<128x128xf32> -> vector<128x128xf32>
      %cst_23 = arith.constant 0xFF800000 : f32
      %32 = vector.broadcast %cst_23 : f32 to vector<128x128xf32>
      %33 = arith.select %18, %31, %32 : vector<128x128xi1>, vector<128x128xf32>
      %cst_24 = arith.constant dense<0xFF800000> : vector<128xf32>
      %34 = vector.multi_reduction <maximumf>, %33, %cst_24 [1] : vector<128x128xf32> to vector<128xf32>
      %35 = vector.shape_cast %34 : vector<128xf32> to vector<128x1xf32>
      %36 = vector.broadcast %35 : vector<128x1xf32> to vector<128x128xf32>
      %37 = arith.subf %33, %36 : vector<128x128xf32>
      %38 = math.exp %37 : vector<128x128xf32>
      %cst_25 = arith.constant dense<0.000000e+00> : vector<128xf32>
      %39 = vector.multi_reduction <add>, %38, %cst_25 [1] : vector<128x128xf32> to vector<128xf32>
      %40 = vector.shape_cast %39 : vector<128xf32> to vector<128x1xf32>
      %41 = tpu.reciprocal %40 {approx = true} : vector<128x1xf32> -> vector<128x1xf32>
      %42 = vector.broadcast %41 : vector<128x1xf32> to vector<128x128xf32>
      %43 = arith.mulf %38, %42 : vector<128x128xf32>
      %44 = arith.truncf %43 : vector<128x128xf32> to vector<128x128xbf16>
      %cst_26 = arith.constant dense<0.000000e+00> : vector<128x64xf32>
      %45 = tpu.matmul %44, %30, %cst_26 {dimension_numbers = #tpu.dot_dimension_numbers<[1], [0], [0], [1], [0, 0, 1, 1], [], []>} : vector<128x128xbf16>, vector<128x64xbf16>, vector<128x64xf32> -> vector<128x64xf32>
      %46 = arith.index_cast %21 : i32 to index
      %c0_27 = arith.constant 0 : index
      %c0_28 = arith.constant 0 : index
      %47 = vector.load %arg3[%46, %c0_27, %c0_28] : memref<2x128x64xf32, #tpu.memory_space<vmem>>, vector<1x128x64xf32>
      %48 = vector.shape_cast %47 : vector<1x128x64xf32> to vector<128x64xf32>
      %49 = vector.shape_cast %45 : vector<128x64xf32> to vector<1x128x64xf32>
      tpu.vector_store %arg3[%46, %c0_27, %c0_28], %49 {strides = array<i32>} : memref<2x128x64xf32, #tpu.memory_space<vmem>>, vector<1x128x64xf32>,
    }
    %c2_i32_13 = arith.constant 2 : i32
    return
  }
  func.func @transform_0(%arg0: i32) -> (i32, i32, i32) {
    %c0_i32 = arith.constant 0 : i32
    %c0_i32_0 = arith.constant 0 : i32
    %c0_i32_1 = arith.constant 0 : i32
    return %arg0, %c0_i32, %c0_i32_0 : i32, i32, i32
  }
  func.func @transform_1(%arg0: i32) -> (i32, i32) {
    %c0_i32 = arith.constant 0 : i32
    %c0_i32_0 = arith.constant 0 : i32
    %c0_i32_1 = arith.constant 0 : i32
    return %c0_i32, %c0_i32_0 : i32, i32
  }
  func.func @transform_2(%arg0: i32) -> (i32, i32, i32) {
    %c0_i32 = arith.constant 0 : i32
    %c0_i32_0 = arith.constant 0 : i32
    %c0_i32_1 = arith.constant 0 : i32
    return %arg0, %c0_i32, %c0_i32_0 : i32, i32, i32
  }
}

</mosaic_0001>

<bundles_post_ra>
// kernel: tpu_custom_call.1
= control target key start
LH: loop header
LB: loop body
LE: loop exit
PB: predicated region body
PF: predicated region fallthrough
CT: control target
= control target key end

     0   :  { %7 = vsyncpa [#allocation6], 0  ;;  %s4891_s0 = inlined_call_operand.hbm [shape: bf16[4,128,512], index: 0, kind: input, shape index: {}]   ;;  %s4892_s1 = inlined_call_operand.vmem [shape: bf16[512,192], index: 1, kind: input, shape index: {}]   ;;  %s4893_s2 = inlined_call_operand.vmem [shape: f32[4,128,64], index: 2, kind: output, shape index: {}]  }
   0x1   :  { %9 = vsyncpa [#allocation6 + $0x1], 0  ;;  %s3595_s9 = smov 0   ;;  %s3597_s10 = smov 0  }
   0x2   :  { %s3599_s11 = smov 0   ;;  %s3601_s12 = smov 0  }
   0x3 LB: > { %s2579_s13 = sadd.s32 4294967295, %s3571_s12   ;;  %s3615_s14 = sadd.s32 1, %s3571_s12   ;;  %s3571_s12 = sphi %s3601_s12, %s4957_s12   ;;  %s3567_s11 = sphi %s3599_s11, %s4956_s11   ;;  %s3563_s10 = sphi %s3597_s10, %s4955_s10   ;;  %s3559_s9 = sphi %s3595_s9, %s4954_s9  }
   0x4   : > { %s19_s15 = ssub.s32 %s3571_s12, %s3615_s14  ;;  %s22_s16 = sadd.s32 1, %s3567_s11 }
   0x5   : > { %p20_p0 = scmp.eq.s32.totalorder %s19_s15, 0  ;;  %p29_p1 = scmp.ne.s32.totalorder %s3567_s11, %s3563_s10 }
   0x6   : > { %p30_p2 = scmp.eq.s32.totalorder %s3571_s12, 0  ;;  %p35_p3 = scmp.ne.s32.totalorder %s3563_s10, %s3559_s9 }
   0x7   : > { %s3625_s17 = scalar_select %p20_p0, %s3567_s11, %s22_s16  }
   0x8   : > { %p3627_p4 = por %p30_p2, %p29_p1  ;;  %p36_p5 = scmp.eq.s32.totalorder %s2579_s13, 0 }
   0x9   : > { %p3395_p6 = scmp.lt.s32.totalorder %s3571_s12, 2  ;;  %s109_s20 = sand.u32 1, %s3567_s11  }
   0xa   : > { %p3634_p7 = por %p36_p5, %p35_p3  ;;  %s2583_s21 = sshll.u32 %s109_s20, 9 }
   0xb   : > { %s3216_s22 = sshll.u32 %s3571_s12, 9  ;;  %s113_s26 = scalar_lea.vmem [#allocation5], %s2583_s21 }
   0xc   : > { %s119_s25 = scalar_lea.hbm %s4891_s0, %s3216_s22  ;;  %s122_s27 = sshll.u32 %s113_s26, 4  ;;  %s123_s27 = int_to_ptr.vmem [resolvable:$true] %s122_s27 }
   0xd   : > { %s120_s28 = sshll.u32 %s119_s25, 4  ;;  %p3645_p8 = pnand %p3395_p6, %p3627_p4  ;;  %s121_s28 = int_to_ptr.hbm [resolvable:$true] %s120_s28 }
   0xe   : > { %p2587_p9 = scmp.ge.s32.totalorder %s3571_s12, 1  ;;  %s110_s30 = scalar_lea.sflag [#allocation6], %s109_s20 }
   0xf   : > { %s3503_s3 = sshra.s32 %s121_s28, 4  ;;  %p3507_p11 = pneg %p3645_p8  ;;  %s3504_s3 = int_to_ptr.hbm [resolvable:$true] %s3503_s3 }
  0x10   : > { %s3505_s4 = scalar_lea.hbm %s3504_s3, 512  ;;  %s3510_s7 = scalar_lea.hbm %s4891_s0, 1024 }
  0x11   : > { %p3506_p10 = scmp.ne.s32.totalorder %s3504_s3, %s3505_s4  ;;  %p3511_p0 = scmp.lt.s32.totalorder %s3504_s3, %s4891_s0 }
  0x12   : > { %p3512_p1 = scmp.lt.s32.totalorder %s3510_s7, %s3505_s4 }
  0x13   : > { %p3508_p12 = pnand %p3507_p11, %p3506_p10 }
  0x14   : > { %p3513_p2 = por %p3512_p1, %p3511_p0 }
  0x15   : > { %p3509_p13 = pneg %p3508_p12 }
  0x17   : > { %p3514_p3 = pnand %p3513_p2, %p3509_p13 }
  0x19   : > { %3517 = shalt.err (!%p3514_p3)
}
  0x1a   : > { %s3577_s15 = smov 256   ;;  %s3578_s16 = smov 16  }
  0x1b   : > { %3394 = dma.hbm_to_vmem [thread:$0]  (!%p3645_p8), %s121_s28, 8192, %s123_s27, %s110_s30, %s3577_s15, %s3577_s15, %s3578_s16  }
  0x1c   : > { %p130_p4 = scmp.lt.s32.totalorder %s3571_s12, 3 }
  0x1e   : > { %p131_p5 = pnand %p2587_p9, %p130_p4 }
  0x20   : > { %134 = sbr.rel (%p131_p5) target bundleno = 1446 (0x5a6), region = 28 }
  0x25   : > { %s136_s18 = sand.u32 1, %s3563_s10  }
  0x26   : > { %s2588_s20 = sshll.u32 %s136_s18, 9  ;;  %s137_s21 = scalar_lea.sflag [#allocation6], %s136_s18 }
  0x27   : > { %s3664_s22 = scalar_lea.vmem [#allocation5], %s2588_s20 }
  0x28   : > { %3554 = dma.done.wait (%p3634_p7), %s137_s21, 8192  }
  0x29   : > { %3556 = vsyncadd (%p3634_p7), %s137_s21, 4294959104  ;;  %s2589_s23 = sshll.u32 %s2579_s13, 1  ;;  %v2906_v0 = vld [vmem:[%s4892_s1 + $0x70] sm:$0xf]  ;;  %v3297_v1 = vld [vmem:[%s4892_s1 + $0x74] sm:$0xf0] }
  0x2a   : > { %p165_p6 = scmp.lt.s32.totalorder %s2589_s23, 3  ;;  %v2970_v2 = vld [vmem:[%s4892_s1 + $0xf0] sm:$0xf]  ;;  %v2907_v3 = vor.u32 %v3297_v1, %v2906_v0  ;;  %v3313_v4 = vld [vmem:[%s4892_s1 + $0xf4] sm:$0xf0]  ;;  %vm1683_vm0 = vcmask 519168  }
  0x2b   : > { %v3034_v5 = vld [vmem:[%s4892_s1 + $0x170] sm:$0xf]  ;;  %v3329_v6 = vld [vmem:[%s4892_s1 + $0x174] sm:$0xf0]  ;;  %v2971_v7 = vor.u32 %v3313_v4, %v2970_v2  ;;  %v2898_v11 = vld [vmem:[%s4892_s1 + $0x60] sm:$0xf] }
  0x2c   : > { %s4959_s23 = smov (!%p165_p6, %s2589_s23), 3  ;;  %v3035_v8 = vor.u32 %v3329_v6, %v3034_v5  ;;  %v3098_v9 = vld [vmem:[%s4892_s1 + $0x1f0] sm:$0xf]  ;;  %v3345_v10 = vld [vmem:[%s4892_s1 + $0x1f4] sm:$0xf0]  ;;  %939 = vmatpush.bf16.msra.mxu0 %v2907_v3 }
  0x2d   : > { %s3217_s24 = sshll.u32 %s4959_s23, 7  ;;  %v3099_v12 = vor.u32 %v3345_v10, %v3098_v9  ;;  %v3295_v13 = vld [vmem:[%s4892_s1 + $0x64] sm:$0xf0]  ;;  %v2962_v14 = vld [vmem:[%s4892_s1 + $0xe0] sm:$0xf]  ;;  %1028 = vmatpush.bf16.msra.mxu1 %v2971_v7  ;;  %s3579_s23 = smov 64  }
  0x2e   : > { %s3675_s27 = scalar_lea.vmem %s4893_s2, %s3217_s24  ;;  %v3311_v15 = vld [vmem:[%s4892_s1 + $0xe4] sm:$0xf0]  ;;  %1117 = vmatpush.bf16.msra.mxu2 %v3035_v8  ;;  %v2899_v16 = vor.u32 %v3295_v13, %v2898_v11  ;;  %v3026_v18 = vld [vmem:[%s4892_s1 + $0x160] sm:$0xf]  ;;  %v2890_v23 = vld [vmem:[%s4892_s1 + $0x50] sm:$0xf] }
  0x2f   : > { %v2963_v17 = vor.u32 %v3311_v15, %v2962_v14  ;;  %v3327_v19 = vld [vmem:[%s4892_s1 + $0x164] sm:$0xf0]  ;;  %v3090_v20 = vld [vmem:[%s4892_s1 + $0x1e0] sm:$0xf]  ;;  %1206 = vmatpush.bf16.msra.mxu3 %v3099_v12  ;;  %v3293_v24 = vld [vmem:[%s4892_s1 + $0x54] sm:$0xf0] }
  0x30   : > { %v3027_v21 = vor.u32 %v3327_v19, %v3026_v18  ;;  %v3343_v22 = vld [vmem:[%s4892_s1 + $0x1e4] sm:$0xf0]  ;;  %v2954_v26 = vld [vmem:[%s4892_s1 + $0xd0] sm:$0xf]  ;;  %v3309_v27 = vld [vmem:[%s4892_s1 + $0xd4] sm:$0xf0]  ;;  %940 = vmatpush.bf16.msra.mxu0 %v2899_v16  ;;  %v2891_v29 = vor.u32 %v3293_v24, %v2890_v23 }
  0x31   : > { %v3091_v25 = vor.u32 %v3343_v22, %v3090_v20  ;;  %v3018_v28 = vld [vmem:[%s4892_s1 + $0x150] sm:$0xf]  ;;  %v3325_v30 = vld [vmem:[%s4892_s1 + $0x154] sm:$0xf0]  ;;  %1029 = vmatpush.bf16.msra.mxu1 %v2963_v17  ;;  %v2955_v33 = vor.u32 %v3309_v27, %v2954_v26  ;;  %v2882_v35 = vld [vmem:[%s4892_s1 + $0x40] sm:$0xf] }
  0x32   : > { %v3082_v31 = vld [vmem:[%s4892_s1 + $0x1d0] sm:$0xf]  ;;  %v3341_v32 = vld [vmem:[%s4892_s1 + $0x1d4] sm:$0xf0]  ;;  %1118 = vmatpush.bf16.msra.mxu2 %v3027_v21  ;;  %v3019_v34 = vor.u32 %v3325_v30, %v3018_v28  ;;  %v3291_v36 = vld [vmem:[%s4892_s1 + $0x44] sm:$0xf0] }
  0x33   : > { %v2946_v37 = vld [vmem:[%s4892_s1 + $0xc0] sm:$0xf]  ;;  %1207 = vmatpush.bf16.msra.mxu3 %v3091_v25  ;;  %v3083_v38 = vor.u32 %v3341_v32, %v3082_v31  ;;  %v3307_v39 = vld [vmem:[%s4892_s1 + $0xc4] sm:$0xf0]  ;;  %v2883_v44 = vor.u32 %v3291_v36, %v2882_v35  ;;  %v2874_v47 = vld [vmem:[%s4892_s1 + $0x30] sm:$0xf] }
  0x34   : > { %v3010_v40 = vld [vmem:[%s4892_s1 + $0x140] sm:$0xf]  ;;  %v3323_v41 = vld [vmem:[%s4892_s1 + $0x144] sm:$0xf0]  ;;  %941 = vmatpush.bf16.msra.mxu0 %v2891_v29  ;;  %v2947_v45 = vor.u32 %v3307_v39, %v2946_v37  ;;  %v3289_v48 = vld [vmem:[%s4892_s1 + $0x34] sm:$0xf0] }
  0x35   : > { %v3074_v42 = vld [vmem:[%s4892_s1 + $0x1c0] sm:$0xf]  ;;  %v3339_v43 = vld [vmem:[%s4892_s1 + $0x1c4] sm:$0xf0]  ;;  %1030 = vmatpush.bf16.msra.mxu1 %v2955_v33  ;;  %v3011_v46 = vor.u32 %v3323_v41, %v3010_v40  ;;  %v2938_v49 = vld [vmem:[%s4892_s1 + $0xb0] sm:$0xf]  ;;  %v2875_v56 = vor.u32 %v3289_v48, %v2874_v47 }
  0x36   : > { %1119 = vmatpush.bf16.msra.mxu2 %v3019_v34  ;;  %v3075_v50 = vor.u32 %v3339_v43, %v3074_v42  ;;  %v3305_v51 = vld [vmem:[%s4892_s1 + $0xb4] sm:$0xf0]  ;;  %v3002_v52 = vld [vmem:[%s4892_s1 + $0x130] sm:$0xf]  ;;  %v2866_v59 = vld [vmem:[%s4892_s1 + $0x20] sm:$0xf] }
  0x37   : > { %1208 = vmatpush.bf16.msra.mxu3 %v3083_v38  ;;  %v3321_v53 = vld [vmem:[%s4892_s1 + $0x134] sm:$0xf0]  ;;  %v3066_v54 = vld [vmem:[%s4892_s1 + $0x1b0] sm:$0xf]  ;;  %v2939_v57 = vor.u32 %v3305_v51, %v2938_v49  ;;  %v3287_v60 = vld [vmem:[%s4892_s1 + $0x24] sm:$0xf0] }
  0x38   : > { %v3337_v55 = vld [vmem:[%s4892_s1 + $0x1b4] sm:$0xf0]  ;;  %942 = vmatpush.bf16.msra.mxu0 %v2883_v44  ;;  %v3003_v58 = vor.u32 %v3321_v53, %v3002_v52  ;;  %v2930_v61 = vld [vmem:[%s4892_s1 + $0xa0] sm:$0xf]  ;;  %v3303_v63 = vld [vmem:[%s4892_s1 + $0xa4] sm:$0xf0]  ;;  %v2867_v4 = vor.u32 %v3287_v60, %v2866_v59 }
  0x39   : > { %1031 = vmatpush.bf16.msra.mxu1 %v2947_v45  ;;  %v3067_v62 = vor.u32 %v3337_v55, %v3066_v54  ;;  %v2994_v0 = vld [vmem:[%s4892_s1 + $0x120] sm:$0xf]  ;;  %v3319_v1 = vld [vmem:[%s4892_s1 + $0x124] sm:$0xf0]  ;;  %v2931_v5 = vor.u32 %v3303_v63, %v2930_v61  ;;  %v2858_v7 = vld [vmem:[%s4892_s1 + $0x10] sm:$0xf] }
  0x3a   : > { %1120 = vmatpush.bf16.msra.mxu2 %v3011_v46  ;;  %v3058_v2 = vld [vmem:[%s4892_s1 + $0x1a0] sm:$0xf]  ;;  %v3335_v3 = vld [vmem:[%s4892_s1 + $0x1a4] sm:$0xf0]  ;;  %v2995_v6 = vor.u32 %v3319_v1, %v2994_v0  ;;  %v3285_v8 = vld [vmem:[%s4892_s1 + $0x14] sm:$0xf0] }
  0x3b   : > { %1209 = vmatpush.bf16.msra.mxu3 %v3075_v50  ;;  %v2922_v9 = vld [vmem:[%s4892_s1 + $0x90] sm:$0xf]  ;;  %v3059_v10 = vor.u32 %v3335_v3, %v3058_v2  ;;  %v3301_v11 = vld [vmem:[%s4892_s1 + $0x94] sm:$0xf0]  ;;  %v2850_v16 = vld [vmem:[%s4892_s1] sm:$0xf]  ;;  %v2859_v17 = vor.u32 %v3285_v8, %v2858_v7 }
  0x3c   : > { %943 = vmatpush.bf16.msra.mxu0 %v2875_v56  ;;  %v2986_v12 = vld [vmem:[%s4892_s1 + $0x110] sm:$0xf]  ;;  %v3317_v13 = vld [vmem:[%s4892_s1 + $0x114] sm:$0xf0]  ;;  %v3283_v18 = vld [vmem:[%s4892_s1 + $0x4] sm:$0xf0]  ;;  %v2923_v21 = vor.u32 %v3301_v11, %v2922_v9 }
  0x3d   : > { %1032 = vmatpush.bf16.msra.mxu1 %v2939_v57  ;;  %v3050_v14 = vld [vmem:[%s4892_s1 + $0x190] sm:$0xf]  ;;  %v3333_v15 = vld [vmem:[%s4892_s1 + $0x194] sm:$0xf0]  ;;  %v2914_v19 = vld [vmem:[%s4892_s1 + $0x80] sm:$0xf]  ;;  %v2987_v22 = vor.u32 %v3317_v13, %v2986_v12  ;;  %v2851_v33 = vor.u32 %v3283_v18, %v2850_v16 }
  0x3e   : > { %1121 = vmatpush.bf16.msra.mxu2 %v3003_v58  ;;  %v3299_v20 = vld [vmem:[%s4892_s1 + $0x84] sm:$0xf0]  ;;  %v2978_v23 = vld [vmem:[%s4892_s1 + $0x100] sm:$0xf]  ;;  %v3051_v26 = vor.u32 %v3333_v15, %v3050_v14  ;;  %v3220_v29 = vld [vmem:[%s3664_s22 + $0xc] sm:$0xf0] }
  0x3f   : > { %1210 = vmatpush.bf16.msra.mxu3 %v3067_v62  ;;  %v3315_v24 = vld [vmem:[%s4892_s1 + $0x104] sm:$0xf0]  ;;  %v3042_v25 = vld [vmem:[%s4892_s1 + $0x180] sm:$0xf]  ;;  %v3218_v30 = vld [vmem:[%s3664_s22 + $0x4] sm:$0xf]  ;;  %v2915_v37 = vor.u32 %v3299_v20, %v2914_v19 }
  0x40   : > { %944 = vmatpush.bf16.msra.mxu0 %v2867_v4  ;;  %v3331_v27 = vld [vmem:[%s4892_s1 + $0x184] sm:$0xf0]  ;;  %v2594_v28 = vld [vmem:[%s3664_s22] sm:$0xf]  ;;  %v3328_v31 = vld [vmem:[%s4892_s1 + $0x174] sm:$0xf]  ;;  %v2979_v38 = vor.u32 %v3315_v24, %v2978_v23 }
  0x41   : > { %1033 = vmatpush.bf16.msra.mxu1 %v2931_v5  ;;  %v3036_v32 = vld [vmem:[%s4892_s1 + $0x178] sm:$0xf0]  ;;  %v2596_v34 = vld [vmem:[%s3664_s22 + $0x10] sm:$0xf0]  ;;  %v2602_v39 = vld [vmem:[%s3664_s22 + $0x8] sm:$0xf]  ;;  %v3043_v42 = vor.u32 %v3331_v27, %v3042_v25  ;;  %v3895_v47 = vor.u32 %v3220_v29, %v2594_v28 }
  0x42   : > { %1122 = vmatpush.bf16.msra.mxu2 %v2995_v6  ;;  %v3344_v35 = vld [vmem:[%s4892_s1 + $0x1f4] sm:$0xf]  ;;  %v3100_v36 = vld [vmem:[%s4892_s1 + $0x1f8] sm:$0xf0]  ;;  %v3221_v40 = vld [vmem:[%s3664_s22 + $0x14] sm:$0xf0]  ;;  %v3039_v44 = vor.u32 %v3328_v31, %v3036_v32  ;;  %v3903_v51 = vor.u32 %v3218_v30, %v2596_v34 }
  0x43   : > { %1211 = vmatpush.bf16.msra.mxu3 %v3059_v10  ;;  %v3219_v41 = vld [vmem:[%s3664_s22 + $0xc] sm:$0xf]  ;;  %v2604_v43 = vld [vmem:[%s3664_s22 + $0x18] sm:$0xf0]  ;;  %v3296_v45 = vld [vmem:[%s4892_s1 + $0x74] sm:$0xf]  ;;  %v3103_v48 = vor.u32 %v3344_v35, %v3100_v36  ;;  %v3905_v52 = vor.u32 %v3221_v40, %v2602_v39 }
  0x44   : > { %945 = vmatpush.bf16.msra.mxu0 %v2859_v17  ;;  %v2908_v46 = vld [vmem:[%s4892_s1 + $0x78] sm:$0xf0]  ;;  %v3312_v49 = vld [vmem:[%s4892_s1 + $0xf4] sm:$0xf]  ;;  %v3907_v53 = vor.u32 %v3219_v41, %v2604_v43  ;;  %v3326_v56 = vld [vmem:[%s4892_s1 + $0x164] sm:$0xf] }
  0x45   : > { %1034 = vmatpush.bf16.msra.mxu1 %v2923_v21  ;;  %v2972_v50 = vld [vmem:[%s4892_s1 + $0xf8] sm:$0xf0]  ;;  %v2911_v54 = vor.u32 %v3296_v45, %v2908_v46  ;;  %v3028_v57 = vld [vmem:[%s4892_s1 + $0x168] sm:$0xf0]  ;;  %v3342_v58 = vld [vmem:[%s4892_s1 + $0x1e4] sm:$0xf] }
  0x46   : > { %1123 = vmatpush.bf16.msra.mxu2 %v2987_v22  ;;  %v2975_v55 = vor.u32 %v3312_v49, %v2972_v50  ;;  %v3031_v59 = vor.u32 %v3326_v56, %v3028_v57  ;;  %v3092_v60 = vld [vmem:[%s4892_s1 + $0x1e8] sm:$0xf0]  ;;  %v3294_v61 = vld [vmem:[%s4892_s1 + $0x64] sm:$0xf]  ;;  %v2610_v4 = vld [vmem:[%s3664_s22 + $0x20] sm:$0xf] }
  0x47   : > { %1212 = vmatpush.bf16.msra.mxu3 %v3051_v26  ;;  %v2900_v62 = vld [vmem:[%s4892_s1 + $0x68] sm:$0xf0]  ;;  %v3095_v63 = vor.u32 %v3342_v58, %v3092_v60  ;;  %v3310_v1 = vld [vmem:[%s4892_s1 + $0xe4] sm:$0xf]  ;;  %v3224_v5 = vld [vmem:[%s3664_s22 + $0x2c] sm:$0xf0] }
  0x48   : > { %946 = vmatpush.bf16.msra.mxu0 %v2851_v33  ;;  %v2903_v0 = vor.u32 %v3294_v61, %v2900_v62  ;;  %v2964_v2 = vld [vmem:[%s4892_s1 + $0xe8] sm:$0xf0]  ;;  %v3222_v6 = vld [vmem:[%s3664_s22 + $0x24] sm:$0xf]  ;;  %v2612_v7 = vld [vmem:[%s3664_s22 + $0x30] sm:$0xf0]  ;;  %v3945_v12 = vor.u32 %v3224_v5, %v2610_v4 }
  0x49   : > { %1035 = vmatpush.bf16.msra.mxu1 %v2915_v37  ;;  %v2967_v3 = vor.u32 %v3310_v1, %v2964_v2  ;;  %v2618_v8 = vld [vmem:[%s3664_s22 + $0x28] sm:$0xf]  ;;  %v3225_v9 = vld [vmem:[%s3664_s22 + $0x34] sm:$0xf0]  ;;  %v3223_v10 = vld [vmem:[%s3664_s22 + $0x2c] sm:$0xf]  ;;  %v3947_v13 = vor.u32 %v3222_v6, %v2612_v7 }
  0x4a   : > { %1124 = vmatpush.bf16.msra.mxu2 %v2979_v38  ;;  %v2620_v11 = vld [vmem:[%s3664_s22 + $0x38] sm:$0xf0]  ;;  %v3949_v14 = vor.u32 %v3225_v9, %v2618_v8  ;;  %v2626_v16 = vld [vmem:[%s3664_s22 + $0x40] sm:$0xf]  ;;  %v3228_v17 = vld [vmem:[%s3664_s22 + $0x4c] sm:$0xf0] }
  0x4b   : > { %1213 = vmatpush.bf16.msra.mxu3 %v3043_v42  ;;  %947 = vmatmul.bf16.vlgmr.msra.gmra.mxu0 %v3895_v47  ;;  %v3951_v15 = vor.u32 %v3223_v10, %v2620_v11  ;;  %v3226_v18 = vld [vmem:[%s3664_s22 + $0x44] sm:$0xf]  ;;  %v2628_v19 = vld [vmem:[%s3664_s22 + $0x50] sm:$0xf0]  ;;  %v2634_v20 = vld [vmem:[%s3664_s22 + $0x48] sm:$0xf]  ;;  %v3965_v24 = vor.u32 %v3228_v17, %v2626_v16 }
  0x4c   : > { %1036 = vmatmul.bf16.vlgmr.msra.gmra.mxu1 %v3903_v51  ;;  %1295 = vmatpush.bf16.msrb.mxu0 %v2911_v54  ;;  %v3229_v21 = vld [vmem:[%s3664_s22 + $0x54] sm:$0xf0]  ;;  %v3227_v22 = vld [vmem:[%s3664_s22 + $0x4c] sm:$0xf]  ;;  %v2636_v23 = vld [vmem:[%s3664_s22 + $0x58] sm:$0xf0]  ;;  %v3967_v25 = vor.u32 %v3226_v18, %v2628_v19 }
  0x4d   : > { %1125 = vmatmul.bf16.vlgmr.msra.gmra.mxu2 %v3905_v52  ;;  %1384 = vmatpush.bf16.msrb.mxu1 %v2975_v55  ;;  %v3969_v26 = vor.u32 %v3229_v21, %v2634_v20  ;;  %v3971_v27 = vor.u32 %v3227_v22, %v2636_v23  ;;  %v3324_v28 = vld [vmem:[%s4892_s1 + $0x154] sm:$0xf]  ;;  %v3020_v29 = vld [vmem:[%s4892_s1 + $0x158] sm:$0xf0]  ;;  %v2642_v40 = vld [vmem:[%s3664_s22 + $0x60] sm:$0xf] }
  0x4e   : > { %1473 = vmatpush.bf16.msrb.mxu2 %v3039_v44  ;;  %1214 = vmatmul.bf16.vlgmr.msra.gmra.mxu3 %v3907_v53  ;;  %v3340_v30 = vld [vmem:[%s4892_s1 + $0x1d4] sm:$0xf]  ;;  %v3023_v31 = vor.u32 %v3324_v28, %v3020_v29  ;;  %v3084_v32 = vld [vmem:[%s4892_s1 + $0x1d8] sm:$0xf0]  ;;  %v3232_v41 = vld [vmem:[%s3664_s22 + $0x6c] sm:$0xf0] }
  0x4f   : > { %1562 = vmatpush.bf16.msrb.mxu3 %v3103_v48  ;;  %v3292_v33 = vld [vmem:[%s4892_s1 + $0x54] sm:$0xf]  ;;  %v2892_v34 = vld [vmem:[%s4892_s1 + $0x58] sm:$0xf0]  ;;  %v3087_v35 = vor.u32 %v3340_v30, %v3084_v32  ;;  %v3230_v42 = vld [vmem:[%s3664_s22 + $0x64] sm:$0xf]  ;;  %v4009_v49 = vor.u32 %v3232_v41, %v2642_v40 }
  0x50   : > { %1296 = vmatpush.bf16.msrb.mxu0 %v2903_v0  ;;  %v2895_v36 = vor.u32 %v3292_v33, %v2892_v34  ;;  %v3308_v37 = vld [vmem:[%s4892_s1 + $0xd4] sm:$0xf]  ;;  %v2956_v38 = vld [vmem:[%s4892_s1 + $0xd8] sm:$0xf0]  ;;  %v2650_v44 = vld [vmem:[%s3664_s22 + $0x68] sm:$0xf] }
  0x51   : > { %1385 = vmatpush.bf16.msrb.mxu1 %v2967_v3  ;;  %v2959_v39 = vor.u32 %v3308_v37, %v2956_v38  ;;  %v2644_v43 = vld [vmem:[%s3664_s22 + $0x70] sm:$0xf0]  ;;  %v3233_v45 = vld [vmem:[%s3664_s22 + $0x74] sm:$0xf0]  ;;  %v3231_v46 = vld [vmem:[%s3664_s22 + $0x6c] sm:$0xf] }
  0x52   : > { %1474 = vmatpush.bf16.msrb.mxu2 %v3031_v59  ;;  %v2652_v48 = vld [vmem:[%s3664_s22 + $0x78] sm:$0xf0]  ;;  %v4011_v50 = vor.u32 %v3230_v42, %v2644_v43  ;;  %v4013_v54 = vor.u32 %v3233_v45, %v2650_v44  ;;  %v2658_v56 = vld [vmem:[%s3664_s22 + $0x80] sm:$0xf]  ;;  %v3236_v57 = vld [vmem:[%s3664_s22 + $0x8c] sm:$0xf0] }
  0x53   : > { %1563 = vmatpush.bf16.msrb.mxu3 %v3095_v63  ;;  %v4015_v55 = vor.u32 %v3231_v46, %v2652_v48  ;;  %v3234_v58 = vld [vmem:[%s3664_s22 + $0x84] sm:$0xf]  ;;  %v2660_v59 = vld [vmem:[%s3664_s22 + $0x90] sm:$0xf0]  ;;  %v2666_v60 = vld [vmem:[%s3664_s22 + $0x88] sm:$0xf]  ;;  %v4029_v0 = vor.u32 %v3236_v57, %v2658_v56 }
  0x54   : > { %1297 = vmatpush.bf16.msrb.mxu0 %v2895_v36  ;;  %v3237_v61 = vld [vmem:[%s3664_s22 + $0x94] sm:$0xf0]  ;;  %v3235_v62 = vld [vmem:[%s3664_s22 + $0x8c] sm:$0xf]  ;;  %v2668_v63 = vld [vmem:[%s3664_s22 + $0x98] sm:$0xf0]  ;;  %v4031_v1 = vor.u32 %v3234_v58, %v2660_v59 }
  0x55   : > { %1386 = vmatpush.bf16.msrb.mxu1 %v2959_v39  ;;  %v4033_v2 = vor.u32 %v3237_v61, %v2666_v60  ;;  %v4035_v3 = vor.u32 %v3235_v62, %v2668_v63  ;;  %v3322_v4 = vld [vmem:[%s4892_s1 + $0x144] sm:$0xf]  ;;  %v3012_v5 = vld [vmem:[%s4892_s1 + $0x148] sm:$0xf0]  ;;  %v2674_v20 = vld [vmem:[%s3664_s22 + $0xa0] sm:$0xf] }
  0x56   : > { %1475 = vmatpush.bf16.msrb.mxu2 %v3023_v31  ;;  %v3338_v6 = vld [vmem:[%s4892_s1 + $0x1c4] sm:$0xf]  ;;  %v3015_v7 = vor.u32 %v3322_v4, %v3012_v5  ;;  %v3076_v8 = vld [vmem:[%s4892_s1 + $0x1c8] sm:$0xf0]  ;;  %v3240_v21 = vld [vmem:[%s3664_s22 + $0xac] sm:$0xf0] }
  0x57   : > { %1564 = vmatpush.bf16.msrb.mxu3 %v3087_v35  ;;  %v3290_v9 = vld [vmem:[%s4892_s1 + $0x44] sm:$0xf]  ;;  %v2884_v10 = vld [vmem:[%s4892_s1 + $0x48] sm:$0xf0]  ;;  %v3079_v11 = vor.u32 %v3338_v6, %v3076_v8  ;;  %v2676_v23 = vld [vmem:[%s3664_s22 + $0xb0] sm:$0xf0]  ;;  %v4073_v32 = vor.u32 %v3240_v21, %v2674_v20 }
  0x58   : > { %v2887_v16 = vor.u32 %v3290_v9, %v2884_v10  ;;  %v3306_v17 = vld [vmem:[%s4892_s1 + $0xc4] sm:$0xf]  ;;  %v2948_v18 = vld [vmem:[%s4892_s1 + $0xc8] sm:$0xf0]  ;;  %v2682_v28 = vld [vmem:[%s3664_s22 + $0xa8] sm:$0xf] }
  0x59   : > { %v2951_v19 = vor.u32 %v3306_v17, %v2948_v18  ;;  %v3238_v22 = vld [vmem:[%s3664_s22 + $0xa4] sm:$0xf]  ;;  %v3241_v29 = vld [vmem:[%s3664_s22 + $0xb4] sm:$0xf0]  ;;  %v3239_v30 = vld [vmem:[%s3664_s22 + $0xac] sm:$0xf] }
  0x5a   : > { %1476 = vmatpush.bf16.msrb.mxu2 %v3015_v7  ;;  %1298 = vmatpush.bf16.msrb.mxu0 %v2887_v16  ;;  %v2684_v31 = vld [vmem:[%s3664_s22 + $0xb8] sm:$0xf0]  ;;  %v4075_v33 = vor.u32 %v3238_v22, %v2676_v23  ;;  %v4077_v34 = vor.u32 %v3241_v29, %v2682_v28  ;;  %v2690_v36 = vld [vmem:[%s3664_s22 + $0xc0] sm:$0xf]  ;;  %v3244_v37 = vld [vmem:[%s3664_s22 + $0xcc] sm:$0xf0] }
  0x5b   : > { %952 = vmatmul.bf16.gmra.mxu0 %v3945_v12  ;;  %1565 = vmatpush.bf16.msrb.mxu3 %v3079_v11  ;;  %v4079_v35 = vor.u32 %v3239_v30, %v2684_v31  ;;  %v3242_v38 = vld [vmem:[%s3664_s22 + $0xc4] sm:$0xf]  ;;  %v2692_v39 = vld [vmem:[%s3664_s22 + $0xd0] sm:$0xf0]  ;;  %v2698_v40 = vld [vmem:[%s3664_s22 + $0xc8] sm:$0xf]  ;;  %v4093_v44 = vor.u32 %v3244_v37, %v2690_v36 }
  0x5c   : > { %1041 = vmatmul.bf16.gmra.mxu1 %v3947_v13  ;;  %v3245_v41 = vld [vmem:[%s3664_s22 + $0xd4] sm:$0xf0]  ;;  %v3243_v42 = vld [vmem:[%s3664_s22 + $0xcc] sm:$0xf]  ;;  %v2700_v43 = vld [vmem:[%s3664_s22 + $0xd8] sm:$0xf0]  ;;  %v4095_v45 = vor.u32 %v3242_v38, %v2692_v39 }
  0x5d   : > { %1130 = vmatmul.bf16.gmra.mxu2 %v3949_v14  ;;  %1387 = vmatpush.bf16.msrb.mxu1 %v2951_v19  ;;  %v4097_v46 = vor.u32 %v3245_v41, %v2698_v40  ;;  %v4099_v48 = vor.u32 %v3243_v42, %v2700_v43  ;;  %v3320_v56 = vld [vmem:[%s4892_s1 + $0x134] sm:$0xf]  ;;  %v3004_v57 = vld [vmem:[%s4892_s1 + $0x138] sm:$0xf0]  ;;  %v2706_v62 = vld [vmem:[%s3664_s22 + $0xe0] sm:$0xf] }
  0x5e   : > { %1219 = vmatmul.bf16.gmra.mxu3 %v3951_v15  ;;  %v3336_v58 = vld [vmem:[%s4892_s1 + $0x1b4] sm:$0xf]  ;;  %v3007_v59 = vor.u32 %v3320_v56, %v3004_v57  ;;  %v3068_v60 = vld [vmem:[%s4892_s1 + $0x1b8] sm:$0xf0]  ;;  %v3248_v63 = vld [vmem:[%s3664_s22 + $0xec] sm:$0xf0] }
  0x5f   : > { %v3071_v61 = vor.u32 %v3336_v58, %v3068_v60  ;;  %v3246_v4 = vld [vmem:[%s3664_s22 + $0xe4] sm:$0xf]  ;;  %v2708_v5 = vld [vmem:[%s3664_s22 + $0xf0] sm:$0xf0]  ;;  %v2714_v6 = vld [vmem:[%s3664_s22 + $0xe8] sm:$0xf]  ;;  %v4134_v17 = vor.u32 %v3248_v63, %v2706_v62 }
  0x60   : > { %1477 = vmatpush.bf16.msrb.mxu2 %v3007_v59  ;;  %v3249_v7 = vld [vmem:[%s3664_s22 + $0xf4] sm:$0xf0]  ;;  %v3247_v8 = vld [vmem:[%s3664_s22 + $0xec] sm:$0xf]  ;;  %v2716_v9 = vld [vmem:[%s3664_s22 + $0xf8] sm:$0xf0]  ;;  %v4139_v20 = vor.u32 %v3246_v4, %v2708_v5 }
  0x61   : > { %1566 = vmatpush.bf16.msrb.mxu3 %v3071_v61  ;;  %v3288_v10 = vld [vmem:[%s4892_s1 + $0x34] sm:$0xf]  ;;  %v2876_v11 = vld [vmem:[%s4892_s1 + $0x38] sm:$0xf0]  ;;  %v4141_v21 = vor.u32 %v3249_v7, %v2714_v6  ;;  %v4143_v23 = vor.u32 %v3247_v8, %v2716_v9  ;;  %v2722_v28 = vld [vmem:[%s3664_s22 + $0x100] sm:$0xf] }
  0x62   : > { %v3304_v16 = vld [vmem:[%s4892_s1 + $0xb4] sm:$0xf]  ;;  %v2879_v18 = vor.u32 %v3288_v10, %v2876_v11  ;;  %v2940_v19 = vld [vmem:[%s4892_s1 + $0xb8] sm:$0xf0]  ;;  %v3252_v29 = vld [vmem:[%s3664_s22 + $0x10c] sm:$0xf0] }
  0x63   : > { %v2943_v22 = vor.u32 %v3304_v16, %v2940_v19  ;;  %v3250_v30 = vld [vmem:[%s3664_s22 + $0x104] sm:$0xf]  ;;  %v2724_v31 = vld [vmem:[%s3664_s22 + $0x110] sm:$0xf0]  ;;  %v2730_v36 = vld [vmem:[%s3664_s22 + $0x108] sm:$0xf]  ;;  %v4157_v40 = vor.u32 %v3252_v29, %v2722_v28 }
  0x64   : > { %1299 = vmatpush.bf16.msrb.mxu0 %v2879_v18  ;;  %v3253_v37 = vld [vmem:[%s3664_s22 + $0x114] sm:$0xf0]  ;;  %v3251_v38 = vld [vmem:[%s3664_s22 + $0x10c] sm:$0xf]  ;;  %v2732_v39 = vld [vmem:[%s3664_s22 + $0x118] sm:$0xf0]  ;;  %v4159_v42 = vor.u32 %v3250_v30, %v2724_v31 }
  0x65   : > { %1388 = vmatpush.bf16.msrb.mxu1 %v2943_v22  ;;  %v4161_v43 = vor.u32 %v3253_v37, %v2730_v36  ;;  %v4163_v57 = vor.u32 %v3251_v38, %v2732_v39  ;;  %v3318_v59 = vld [vmem:[%s4892_s1 + $0x124] sm:$0xf]  ;;  %v2996_v60 = vld [vmem:[%s4892_s1 + $0x128] sm:$0xf0]  ;;  %v2738_v11 = vld [vmem:[%s3664_s22 + $0x120] sm:$0xf] }
  0x66   : > { %v3334_v61 = vld [vmem:[%s4892_s1 + $0x1a4] sm:$0xf]  ;;  %v2999_v63 = vor.u32 %v3318_v59, %v2996_v60  ;;  %v3060_v4 = vld [vmem:[%s4892_s1 + $0x1a8] sm:$0xf0]  ;;  %v3256_v16 = vld [vmem:[%s3664_s22 + $0x12c] sm:$0xf0] }
  0x67   : > { %v3063_v8 = vor.u32 %v3334_v61, %v3060_v4  ;;  %v3254_v19 = vld [vmem:[%s3664_s22 + $0x124] sm:$0xf]  ;;  %v2740_v22 = vld [vmem:[%s3664_s22 + $0x130] sm:$0xf0]  ;;  %v2746_v28 = vld [vmem:[%s3664_s22 + $0x128] sm:$0xf] }
  0x68   : > { %1478 = vmatpush.bf16.msrb.mxu2 %v2999_v63  ;;  %v3257_v29 = vld [vmem:[%s3664_s22 + $0x134] sm:$0xf0]  ;;  %v3255_v30 = vld [vmem:[%s3664_s22 + $0x12c] sm:$0xf]  ;;  %v2748_v31 = vld [vmem:[%s3664_s22 + $0x138] sm:$0xf0]  ;;  %v4205_v63 = vor.u32 %v3254_v19, %v2740_v22 }
  0x69   : > { %1567 = vmatpush.bf16.msrb.mxu3 %v3063_v8  ;;  %v3286_v37 = vld [vmem:[%s4892_s1 + $0x24] sm:$0xf]  ;;  %v2868_v38 = vld [vmem:[%s4892_s1 + $0x28] sm:$0xf0]  ;;  %v4207_v4 = vor.u32 %v3257_v29, %v2746_v28 }
  0x6a   : > { %v2932_v59 = vld [vmem:[%s4892_s1 + $0xa8] sm:$0xf0] }
  0x6b   : > { %957 = vmatmul.bf16.gmra.mxu0 %v3965_v24 }
  0x6c   : > { %1046 = vmatmul.bf16.gmra.mxu1 %v3967_v25 }
  0x6d   : > { %1135 = vmatmul.bf16.gmra.mxu2 %v3969_v26 }
  0x6e   : > { %1224 = vmatmul.bf16.gmra.mxu3 %v3971_v27 }
  0x7b   : > { %962 = vmatmul.bf16.gmra.mxu0 %v4009_v49 }
  0x7c   : > { %1051 = vmatmul.bf16.gmra.mxu1 %v4011_v50 }
  0x7d   : > { %1140 = vmatmul.bf16.gmra.mxu2 %v4013_v54 }
  0x7e   : > { %1229 = vmatmul.bf16.gmra.mxu3 %v4015_v55 }
  0x8b   : > { %967 = vmatmul.bf16.gmra.mxu0 %v4029_v0 }
  0x8c   : > { %1056 = vmatmul.bf16.gmra.mxu1 %v4031_v1 }
  0x8d   : > { %1145 = vmatmul.bf16.gmra.mxu2 %v4033_v2 }
  0x8e   : > { %1234 = vmatmul.bf16.gmra.mxu3 %v4035_v3 }
  0x9b   : > { %972 = vmatmul.bf16.gmra.mxu0 %v4073_v32 }
  0x9c   : > { %1061 = vmatmul.bf16.gmra.mxu1 %v4075_v33 }
  0x9d   : > { %1150 = vmatmul.bf16.gmra.mxu2 %v4077_v34 }
  0x9e   : > { %1239 = vmatmul.bf16.gmra.mxu3 %v4079_v35 }
  0xab   : > { %977 = vmatmul.bf16.gmra.mxu0 %v4093_v44 }
  0xac   : > { %1066 = vmatmul.bf16.gmra.mxu1 %v4095_v45 }
  0xad   : > { %1155 = vmatmul.bf16.gmra.mxu2 %v4097_v46 }
  0xae   : > { %1244 = vmatmul.bf16.gmra.mxu3 %v4099_v48 }
  0xbb   : > { %982 = vmatmul.bf16.gmra.mxu0 %v4134_v17 }
  0xbc   : > { %1071 = vmatmul.bf16.gmra.mxu1 %v4139_v20 }
  0xbd   : > { %1160 = vmatmul.bf16.gmra.mxu2 %v4141_v21 }
  0xbe   : > { %1249 = vmatmul.bf16.gmra.mxu3 %v4143_v23 }
  0xc8   : > { %v948_v41 = vpop.f32.mrf.mxu0 }
  0xc9   : > { %v1037_v56 = vpop.f32.mrf.mxu1 }
  0xca   : > { %v1038_v58 = vadd.f32 %v1037_v56, %v948_v41  ;;  %v4197_v41 = vor.u32 %v3256_v16, %v2738_v11  ;;  %v2871_v56 = vor.u32 %v3286_v37, %v2868_v38  ;;  %v2756_v37 = vld [vmem:[%s3664_s22 + $0x150] sm:$0xf0]  ;;  %v2762_v38 = vld [vmem:[%s3664_s22 + $0x148] sm:$0xf] }
  0xcb   : > { %987 = vmatmul.bf16.gmra.mxu0 %v4157_v40 }
  0xcc   : > { %1076 = vmatmul.bf16.gmra.mxu1 %v4159_v42  ;;  %1300 = vmatpush.bf16.msrb.mxu0 %v2871_v56 }
  0xcd   : > { %1165 = vmatmul.bf16.gmra.mxu2 %v4161_v43 }
  0xce   : > { %1254 = vmatmul.bf16.gmra.mxu3 %v4163_v57 }
  0xd0   : > { %v1126_v62 = vpop.f32.mrf.mxu2  ;;  %v950_v7 = vpop.f32.mrf.mxu0 }
  0xd1   : > { %v1127_v5 = vadd.f32 %v1126_v62, %v1038_v58  ;;  %v1215_v6 = vpop.f32.mrf.mxu3  ;;  %v1039_v9 = vpop.f32.mrf.mxu1  ;;  %v3302_v58 = vld [vmem:[%s4892_s1 + $0xa4] sm:$0xf] }
  0xd2   : > { %v1040_v36 = vadd.f32 %v1039_v9, %v950_v7  ;;  %v4209_v7 = vor.u32 %v3255_v30, %v2748_v31  ;;  %v2754_v30 = vld [vmem:[%s3664_s22 + $0x140] sm:$0xf]  ;;  %v3260_v31 = vld [vmem:[%s3664_s22 + $0x14c] sm:$0xf0] }
  0xd3   : > { %v1216_v10 = vadd.f32 %v1215_v6, %v1127_v5  ;;  %v2935_v5 = vor.u32 %v3302_v58, %v2932_v59  ;;  %v3259_v58 = vld [vmem:[%s3664_s22 + $0x14c] sm:$0xf]  ;;  %v2764_v59 = vld [vmem:[%s3664_s22 + $0x158] sm:$0xf0] }
  0xd5   : > { %v1651_v18 = vpack.c.bf16 %v1216_v10, %v1216_v10  ;;  %1389 = vmatpush.bf16.msrb.mxu1 %v2935_v5 }
  0xd7   : > { %1684 = vst.msk [vmem:[#allocation2] sm:$0xf] %vm1683_vm0, %v1651_v18  ;;  %1748 = vrot.lane.b32.xlu0 %v1651_v18, %s3579_s23 }
  0xd8   : > { %v1128_v39 = vpop.f32.mrf.mxu2  ;;  %v953_v62 = vpop.f32.mrf.mxu0 }
  0xd9   : > { %v1129_v60 = vadd.f32 %v1128_v39, %v1040_v36  ;;  %v1217_v61 = vpop.f32.mrf.mxu3  ;;  %v1042_v6 = vpop.f32.mrf.mxu1  ;;  %v3258_v36 = vld [vmem:[%s3664_s22 + $0x144] sm:$0xf]  ;;  %v3261_v39 = vld [vmem:[%s3664_s22 + $0x154] sm:$0xf0] }
  0xda   : > { %v1043_v10 = vadd.f32 %v1042_v6, %v953_v62 }
  0xdb   : > { %v1218_v8 = vadd.f32 %v1217_v61, %v1129_v60  ;;  %992 = vmatmul.bf16.gmra.mxu0 %v4197_v41  ;;  %v4227_v61 = vor.u32 %v3260_v31, %v2754_v30  ;;  %v3332_v31 = vld [vmem:[%s4892_s1 + $0x194] sm:$0xf] }
  0xdc   : > { %1081 = vmatmul.bf16.gmra.mxu1 %v4205_v63 }
  0xdd   : > { %v1652_v9 = vpack.c.bf16 %v1218_v8, %v1218_v8  ;;  %1170 = vmatmul.bf16.gmra.mxu2 %v4207_v4  ;;  %v4229_v8 = vor.u32 %v3258_v36, %v2756_v37  ;;  %v3052_v36 = vld [vmem:[%s4892_s1 + $0x198] sm:$0xf0] }
  0xde   : > { %1259 = vmatmul.bf16.gmra.mxu3 %v4209_v7 }
  0xdf   : > { %1685 = vst.msk [vmem:[#allocation2 + $0x4] sm:$0xf] %vm1683_vm0, %v1652_v9  ;;  %1750 = vrot.lane.b32.xlu0 %v1652_v9, %s3579_s23  ;;  %v4231_v9 = vor.u32 %v3261_v39, %v2762_v38 }
  0xe0   : > { %v1131_v11 = vpop.f32.mrf.mxu2  ;;  %v955_v19 = vpop.f32.mrf.mxu0  ;;  %4915 = vst [vmem:[#allocation8_spill] sm:$0xff] %v4229_v8 }
  0xe1   : > { %v1132_v16 = vadd.f32 %v1131_v11, %v1043_v10  ;;  %v1220_v18 = vpop.f32.mrf.mxu3  ;;  %v1044_v22 = vpop.f32.mrf.mxu1  ;;  %4916 = vst [vmem:[#allocation9_spill] sm:$0xff] %v4231_v9  ;;  %v4233_v11 = vor.u32 %v3259_v58, %v2764_v59 }
  0xe2   : > { %v1045_v56 = vadd.f32 %v1044_v22, %v955_v19  ;;  %v3316_v22 = vld [vmem:[%s4892_s1 + $0x114] sm:$0xf] }
  0xe3   : > { %v1221_v28 = vadd.f32 %v1220_v18, %v1132_v16  ;;  %4917 = vst [vmem:[#allocation10_spill] sm:$0xff] %v4233_v11 }
  0xe5   : > { %v1653_v29 = vpack.c.bf16 %v1221_v28, %v1221_v28  ;;  %v2988_v28 = vld [vmem:[%s4892_s1 + $0x118] sm:$0xf0] }
  0xe6   : > { %v2991_v30 = vor.u32 %v3316_v22, %v2988_v28  ;;  %v3263_v22 = vld [vmem:[%s3664_s22 + $0x16c] sm:$0xf]  ;;  %v2780_v28 = vld [vmem:[%s3664_s22 + $0x178] sm:$0xf0] }
  0xe7   : > { %1686 = vst.msk [vmem:[#allocation2 + $0x8] sm:$0xf] %vm1683_vm0, %v1653_v29  ;;  %1752 = vrot.lane.b32.xlu1 %v1653_v29, %s3579_s23 }
  0xe8   : > { %v1133_v60 = vpop.f32.mrf.mxu2  ;;  %v958_v6 = vpop.f32.mrf.mxu0  ;;  %1479 = vmatpush.bf16.msrb.mxu2 %v2991_v30  ;;  %v2860_v30 = vld [vmem:[%s4892_s1 + $0x18] sm:$0xf0] }
  0xe9   : > { %v1134_v62 = vadd.f32 %v1133_v60, %v1045_v56  ;;  %v1222_v5 = vpop.f32.mrf.mxu3  ;;  %v1047_v10 = vpop.f32.mrf.mxu1  ;;  %v3055_v56 = vor.u32 %v3332_v31, %v3052_v36  ;;  %v2770_v60 = vld [vmem:[%s3664_s22 + $0x160] sm:$0xf] }
  0xea   : > { %v1048_v19 = vadd.f32 %v1047_v10, %v958_v6  ;;  %v3262_v6 = vld [vmem:[%s3664_s22 + $0x164] sm:$0xf]  ;;  %v2772_v10 = vld [vmem:[%s3664_s22 + $0x170] sm:$0xf0] }
  0xeb   : > { %v1223_v16 = vadd.f32 %v1222_v5, %v1134_v62  ;;  %997 = vmatmul.bf16.gmra.mxu0 %v4227_v61  ;;  %1568 = vmatpush.bf16.msrb.mxu3 %v3055_v56  ;;  %v3264_v62 = vld [vmem:[%s3664_s22 + $0x16c] sm:$0xf0] }
  0xec   : > { %1086 = vmatmul.bf16.gmra.mxu1 %v4229_v8  ;;  %v4269_v36 = vor.u32 %v3264_v62, %v2770_v60  ;;  %v4281_v60 = vor.u32 %v3263_v22, %v2780_v28  ;;  %v2786_v28 = vld [vmem:[%s3664_s22 + $0x180] sm:$0xf] }
  0xed   : > { %v1654_v18 = vpack.c.bf16 %v1223_v16, %v1223_v16  ;;  %1175 = vmatmul.bf16.gmra.mxu2 %v4231_v9  ;;  %v2778_v16 = vld [vmem:[%s3664_s22 + $0x168] sm:$0xf] }
  0xee   : > { %1264 = vmatmul.bf16.gmra.mxu3 %v4233_v11  ;;  %4918 = vst [vmem:[#allocation11_spill] sm:$0xff] %v4269_v36 }
  0xef   : > { %1687 = vst.msk [vmem:[#allocation2 + $0xc] sm:$0xf] %vm1683_vm0, %v1654_v18  ;;  %1754 = vrot.lane.b32.xlu1 %v1654_v18, %s3579_s23  ;;  %v3265_v18 = vld [vmem:[%s3664_s22 + $0x174] sm:$0xf0] }
  0xf0   : > { %v1136_v29 = vpop.f32.mrf.mxu2  ;;  %v960_v39 = vpop.f32.mrf.mxu0  ;;  %v4279_v11 = vor.u32 %v3265_v18, %v2778_v16  ;;  %4921 = vst [vmem:[#allocation14_spill] sm:$0xff] %v4281_v60 }
  0xf1   : > { %v1137_v37 = vadd.f32 %v1136_v29, %v1048_v19  ;;  %v1225_v38 = vpop.f32.mrf.mxu3  ;;  %v1049_v58 = vpop.f32.mrf.mxu1  ;;  %v3284_v29 = vld [vmem:[%s4892_s1 + $0x14] sm:$0xf] }
  0xf2   : > { %v1050_v19 = vadd.f32 %v1049_v58, %v960_v39  ;;  %v2924_v39 = vld [vmem:[%s4892_s1 + $0x98] sm:$0xf0]  ;;  %4920 = vst [vmem:[#allocation13_spill] sm:$0xff] %v4279_v11 }
  0xf3   : > { %v1226_v59 = vadd.f32 %v1225_v38, %v1137_v37  ;;  %v2863_v37 = vor.u32 %v3284_v29, %v2860_v30  ;;  %v3300_v38 = vld [vmem:[%s4892_s1 + $0x94] sm:$0xf]  ;;  %v3268_v30 = vld [vmem:[%s3664_s22 + $0x18c] sm:$0xf0] }
  0xf4   : > { %v2927_v9 = vor.u32 %v3300_v38, %v2924_v39  ;;  %v2794_v38 = vld [vmem:[%s3664_s22 + $0x188] sm:$0xf]  ;;  %v3269_v39 = vld [vmem:[%s3664_s22 + $0x194] sm:$0xf0] }
  0xf5   : > { %v1655_v5 = vpack.c.bf16 %v1226_v59, %v1226_v59  ;;  %1301 = vmatpush.bf16.msrb.mxu0 %v2863_v37  ;;  %v2788_v37 = vld [vmem:[%s3664_s22 + $0x190] sm:$0xf0] }
  0xf6   : > { %1390 = vmatpush.bf16.msrb.mxu1 %v2927_v9 }
  0xf7   : > { %1688 = vst.msk [vmem:[#allocation2 + $0x10] sm:$0xf] %vm1683_vm0, %v1655_v5  ;;  %1756 = vrot.lane.b32.xlu2 %v1655_v5, %s3579_s23  ;;  %v4277_v5 = vor.u32 %v3262_v6, %v2772_v10 }
  0xf8   : > { %v1138_v31 = vpop.f32.mrf.mxu2  ;;  %v963_v59 = vpop.f32.mrf.mxu0 }
  0xf9   : > { %v1139_v56 = vadd.f32 %v1138_v31, %v1050_v19  ;;  %v1227_v58 = vpop.f32.mrf.mxu3  ;;  %4919 = vst [vmem:[#allocation12_spill] sm:$0xff] %v4277_v5  ;;  %v1052_v8 = vpop.f32.mrf.mxu1  ;;  %v3266_v31 = vld [vmem:[%s3664_s22 + $0x184] sm:$0xf] }
  0xfa   : > { %v1053_v19 = vadd.f32 %v1052_v8, %v963_v59  ;;  %v2796_v59 = vld [vmem:[%s3664_s22 + $0x198] sm:$0xf0] }
  0xfb   : > { %v1228_v62 = vadd.f32 %v1227_v58, %v1139_v56  ;;  %1002 = vmatmul.bf16.gmra.mxu0 %v4269_v36  ;;  %v3267_v58 = vld [vmem:[%s3664_s22 + $0x18c] sm:$0xf] }
  0xfc   : > { %1091 = vmatmul.bf16.gmra.mxu1 %v4277_v5 }
  0xfd   : > { %v1656_v29 = vpack.c.bf16 %v1228_v62, %v1228_v62  ;;  %1180 = vmatmul.bf16.gmra.mxu2 %v4279_v11  ;;  %v4305_v11 = vor.u32 %v3267_v58, %v2796_v59 }
  0xfe   : > { %1269 = vmatmul.bf16.gmra.mxu3 %v4281_v60 }
  0xff   : > { %1689 = vst.msk [vmem:[#allocation2 + $0x14] sm:$0xf] %vm1683_vm0, %v1656_v29  ;;  %1758 = vrot.lane.b32.xlu2 %v1656_v29, %s3579_s23  ;;  %v4299_v29 = vor.u32 %v3268_v30, %v2786_v28  ;;  %v3330_v30 = vld [vmem:[%s4892_s1 + $0x184] sm:$0xf] }
 0x100   : > { %v1141_v9 = vpop.f32.mrf.mxu2  ;;  %v965_v16 = vpop.f32.mrf.mxu0  ;;  %4925 = vst [vmem:[#allocation18_spill] sm:$0xff] %v4305_v11 }
 0x101   : > { %v1142_v6 = vadd.f32 %v1141_v9, %v1053_v19  ;;  %v1230_v10 = vpop.f32.mrf.mxu3  ;;  %v1054_v8 = vpop.f32.mrf.mxu1  ;;  %4922 = vst [vmem:[#allocation15_spill] sm:$0xff] %v4299_v29 }
 0x102   : > { %v1055_v56 = vadd.f32 %v1054_v8, %v965_v16 }
 0x103   : > { %v1231_v18 = vadd.f32 %v1230_v10, %v1142_v6  ;;  %v4301_v10 = vor.u32 %v3266_v31, %v2788_v37  ;;  %v3044_v31 = vld [vmem:[%s4892_s1 + $0x188] sm:$0xf0] }
 0x105   : > { %v1657_v22 = vpack.c.bf16 %v1231_v18, %v1231_v18  ;;  %4923 = vst [vmem:[#allocation16_spill] sm:$0xff] %v4301_v10  ;;  %v4303_v18 = vor.u32 %v3269_v39, %v2794_v38 }
 0x107   : > { %1690 = vst.msk [vmem:[#allocation2 + $0x18] sm:$0xf] %vm1683_vm0, %v1657_v22  ;;  %1760 = vrot.lane.b32.xlu0 %v1657_v22, %s3579_s23  ;;  %v3314_v22 = vld [vmem:[%s4892_s1 + $0x104] sm:$0xf] }
 0x108   : > { %v1143_v62 = vpop.f32.mrf.mxu2  ;;  %v968_v6 = vpop.f32.mrf.mxu0  ;;  %4924 = vst [vmem:[#allocation17_spill] sm:$0xff] %v4303_v18 }
 0x109   : > { %v1144_v19 = vadd.f32 %v1143_v62, %v1055_v56  ;;  %v1232_v9 = vpop.f32.mrf.mxu3  ;;  %v1057_v60 = vpop.f32.mrf.mxu1  ;;  %v3047_v56 = vor.u32 %v3330_v30, %v3044_v31  ;;  %v2802_v62 = vld [vmem:[%s3664_s22 + $0x1a0] sm:$0xf] }
 0x10a   : > { %v1058_v8 = vadd.f32 %v1057_v60, %v968_v6  ;;  %v3270_v6 = vld [vmem:[%s3664_s22 + $0x1a4] sm:$0xf] }
 0x10b   : > { %v1233_v5 = vadd.f32 %v1232_v9, %v1144_v19  ;;  %1007 = vmatmul.bf16.gmra.mxu0 %v4299_v29  ;;  %1569 = vmatpush.bf16.msrb.mxu3 %v3047_v56  ;;  %v3272_v19 = vld [vmem:[%s3664_s22 + $0x1ac] sm:$0xf0] }
 0x10c   : > { %1096 = vmatmul.bf16.gmra.mxu1 %v4301_v10  ;;  %v4341_v31 = vor.u32 %v3272_v19, %v2802_v62 }
 0x10d   : > { %v1658_v16 = vpack.c.bf16 %v1233_v5, %v1233_v5  ;;  %1185 = vmatmul.bf16.gmra.mxu2 %v4303_v18  ;;  %v2980_v5 = vld [vmem:[%s4892_s1 + $0x108] sm:$0xf0]  ;;  %v2812_v18 = vld [vmem:[%s3664_s22 + $0x1b8] sm:$0xf0] }
 0x10e   : > { %1274 = vmatmul.bf16.gmra.mxu3 %v4305_v11  ;;  %v2983_v28 = vor.u32 %v3314_v22, %v2980_v5  ;;  %v2810_v22 = vld [vmem:[%s3664_s22 + $0x1a8] sm:$0xf]  ;;  %v3273_v5 = vld [vmem:[%s3664_s22 + $0x1b4] sm:$0xf0]  ;;  %v3271_v11 = vld [vmem:[%s3664_s22 + $0x1ac] sm:$0xf] }
 0x10f   : > { %1691 = vst.msk [vmem:[#allocation2 + $0x1c] sm:$0xf] %vm1683_vm0, %v1658_v16  ;;  %1762 = vrot.lane.b32.xlu1 %v1658_v16, %s3579_s23  ;;  %v2804_v16 = vld [vmem:[%s3664_s22 + $0x1b0] sm:$0xf0]  ;;  %v4351_v10 = vor.u32 %v3273_v5, %v2810_v22  ;;  %v4353_v62 = vor.u32 %v3271_v11, %v2812_v18  ;;  %v2818_v5 = vld [vmem:[%s3664_s22 + $0x1c0] sm:$0xf] }
 0x110   : > { %v1146_v60 = vpop.f32.mrf.mxu2  ;;  %v970_v39 = vpop.f32.mrf.mxu0  ;;  %1480 = vmatpush.bf16.msrb.mxu2 %v2983_v28  ;;  %v2852_v28 = vld [vmem:[%s4892_s1 + $0x8] sm:$0xf0] }
 0x111   : > { %v1147_v37 = vadd.f32 %v1146_v60, %v1058_v8  ;;  %v1235_v38 = vpop.f32.mrf.mxu3  ;;  %v1059_v58 = vpop.f32.mrf.mxu1  ;;  %v3282_v60 = vld [vmem:[%s4892_s1 + $0x4] sm:$0xf]  ;;  %4927 = vst [vmem:[#allocation20_spill] sm:$0xff] %v4351_v10 }
 0x112   : > { %v1060_v8 = vadd.f32 %v1059_v58, %v970_v39  ;;  %v2916_v39 = vld [vmem:[%s4892_s1 + $0x88] sm:$0xf0]  ;;  %4928 = vst [vmem:[#allocation21_spill] sm:$0xff] %v4353_v62 }
 0x113   : > { %v1236_v59 = vadd.f32 %v1235_v38, %v1147_v37  ;;  %v2855_v37 = vor.u32 %v3282_v60, %v2852_v28  ;;  %v3298_v38 = vld [vmem:[%s4892_s1 + $0x84] sm:$0xf]  ;;  %v3276_v28 = vld [vmem:[%s3664_s22 + $0x1cc] sm:$0xf0] }
 0x114   : > { %v2919_v29 = vor.u32 %v3298_v38, %v2916_v39  ;;  %v2826_v38 = vld [vmem:[%s3664_s22 + $0x1c8] sm:$0xf]  ;;  %v3277_v39 = vld [vmem:[%s3664_s22 + $0x1d4] sm:$0xf0] }
 0x115   : > { %v1659_v9 = vpack.c.bf16 %v1236_v59, %v1236_v59  ;;  %1302 = vmatpush.bf16.msrb.mxu0 %v2855_v37  ;;  %v2820_v37 = vld [vmem:[%s3664_s22 + $0x1d0] sm:$0xf0] }
 0x116   : > { %1391 = vmatpush.bf16.msrb.mxu1 %v2919_v29 }
 0x117   : > { %1692 = vst.msk [vmem:[#allocation2 + $0x20] sm:$0xf] %vm1683_vm0, %v1659_v9  ;;  %1764 = vrot.lane.b32.xlu2 %v1659_v9, %s3579_s23  ;;  %v4349_v9 = vor.u32 %v3270_v6, %v2804_v16 }
 0x118   : > { %v1148_v30 = vpop.f32.mrf.mxu2  ;;  %v973_v59 = vpop.f32.mrf.mxu0 }
 0x119   : > { %v1149_v56 = vadd.f32 %v1148_v30, %v1060_v8  ;;  %v1237_v58 = vpop.f32.mrf.mxu3  ;;  %4926 = vst [vmem:[#allocation19_spill] sm:$0xff] %v4349_v9  ;;  %v1062_v36 = vpop.f32.mrf.mxu1  ;;  %v3274_v30 = vld [vmem:[%s3664_s22 + $0x1c4] sm:$0xf] }
 0x11a   : > { %v1063_v8 = vadd.f32 %v1062_v36, %v973_v59  ;;  %v2828_v59 = vld [vmem:[%s3664_s22 + $0x1d8] sm:$0xf0] }
 0x11b   : > { %v1238_v19 = vadd.f32 %v1237_v58, %v1149_v56  ;;  %1012 = vmatmul.bf16.gmra.mxu0 %v4341_v31  ;;  %v3275_v58 = vld [vmem:[%s3664_s22 + $0x1cc] sm:$0xf] }
 0x11c   : > { %1101 = vmatmul.bf16.gmra.mxu1 %v4349_v9 }
 0x11d   : > { %v1660_v60 = vpack.c.bf16 %v1238_v19, %v1238_v19  ;;  %1190 = vmatmul.bf16.gmra.mxu2 %v4351_v10  ;;  %v4377_v10 = vor.u32 %v3275_v58, %v2828_v59  ;;  %v2836_v58 = vld [vmem:[%s3664_s22 + $0x1f0] sm:$0xf0]  ;;  %v2842_v59 = vld [vmem:[%s3664_s22 + $0x1e8] sm:$0xf] }
 0x11e   : > { %1279 = vmatmul.bf16.gmra.mxu3 %v4353_v62 }
 0x11f   : > { %1693 = vst.msk [vmem:[#allocation2 + $0x24] sm:$0xf] %vm1683_vm0, %v1660_v60  ;;  %1766 = vrot.lane.b32.xlu0 %v1660_v60, %s3579_s23  ;;  %v4371_v60 = vor.u32 %v3276_v28, %v2818_v5 }
 0x120   : > { %v1151_v11 = vpop.f32.mrf.mxu2  ;;  %v975_v6 = vpop.f32.mrf.mxu0  ;;  %4932 = vst [vmem:[#allocation25_spill] sm:$0xff] %v4377_v10 }
 0x121   : > { %v1152_v29 = vadd.f32 %v1151_v11, %v1063_v8  ;;  %v1240_v18 = vpop.f32.mrf.mxu3  ;;  %v1064_v36 = vpop.f32.mrf.mxu1  ;;  %4929 = vst [vmem:[#allocation22_spill] sm:$0xff] %v4371_v60 }
 0x122   : > { %v1065_v56 = vadd.f32 %v1064_v36, %v975_v6 }
 0x123   : > { %v1241_v16 = vadd.f32 %v1240_v18, %v1152_v29  ;;  %v4373_v18 = vor.u32 %v3274_v30, %v2820_v37 }
 0x125   : > { %v1661_v22 = vpack.c.bf16 %v1241_v16, %v1241_v16  ;;  %4930 = vst [vmem:[#allocation23_spill] sm:$0xff] %v4373_v18  ;;  %v4375_v16 = vor.u32 %v3277_v39, %v2826_v38  ;;  %v2834_v38 = vld [vmem:[%s3664_s22 + $0x1e0] sm:$0xf]  ;;  %v3280_v39 = vld [vmem:[%s3664_s22 + $0x1ec] sm:$0xf0] }
 0x127   : > { %1694 = vst.msk [vmem:[#allocation2 + $0x28] sm:$0xf] %vm1683_vm0, %v1661_v22  ;;  %1768 = vrot.lane.b32.xlu1 %v1661_v22, %s3579_s23 }
 0x128   : > { %v1153_v19 = vpop.f32.mrf.mxu2  ;;  %v978_v29 = vpop.f32.mrf.mxu0  ;;  %4931 = vst [vmem:[#allocation24_spill] sm:$0xff] %v4375_v16 }
 0x129   : > { %v1154_v8 = vadd.f32 %v1153_v19, %v1065_v56  ;;  %v1242_v11 = vpop.f32.mrf.mxu3  ;;  %v1067_v62 = vpop.f32.mrf.mxu1  ;;  %v3278_v56 = vld [vmem:[%s3664_s22 + $0x1e4] sm:$0xf]  ;;  %v3281_v19 = vld [vmem:[%s3664_s22 + $0x1f4] sm:$0xf0] }
 0x12a   : > { %v1068_v36 = vadd.f32 %v1067_v62, %v978_v29  ;;  %v2844_v29 = vld [vmem:[%s3664_s22 + $0x1f8] sm:$0xf0] }
 0x12b   : > { %v1243_v9 = vadd.f32 %v1242_v11, %v1154_v8  ;;  %1017 = vmatmul.bf16.gmra.mxu0 %v4371_v60  ;;  %v3279_v11 = vld [vmem:[%s3664_s22 + $0x1ec] sm:$0xf]  ;;  %s4654_s22 = smov 0  }
 0x12c   : > { %1106 = vmatmul.bf16.gmra.mxu1 %v4373_v18  ;;  %v4401_v18 = vor.u32 %v3279_v11, %v2844_v29 }
 0x12d   : > { %v1662_v6 = vpack.c.bf16 %v1243_v9, %v1243_v9  ;;  %1195 = vmatmul.bf16.gmra.mxu2 %v4375_v16 }
 0x12e   : > { %1284 = vmatmul.bf16.gmra.mxu3 %v4377_v10 }
 0x12f   : > { %1695 = vst.msk [vmem:[#allocation2 + $0x2c] sm:$0xf] %vm1683_vm0, %v1662_v6  ;;  %1770 = vrot.lane.b32.xlu2 %v1662_v6, %s3579_s23 }
 0x130   : > { %v1156_v22 = vpop.f32.mrf.mxu2  ;;  %v980_v28 = vpop.f32.mrf.mxu0 }
 0x131   : > { %v1157_v5 = vadd.f32 %v1156_v22, %v1068_v36  ;;  %v1245_v9 = vpop.f32.mrf.mxu3  ;;  %v1069_v62 = vpop.f32.mrf.mxu1  ;;  %v4395_v36 = vor.u32 %v3280_v39, %v2834_v38 }
 0x132   : > { %v1070_v8 = vadd.f32 %v1069_v62, %v980_v28 }
 0x133   : > { %v1246_v30 = vadd.f32 %v1245_v9, %v1157_v5  ;;  %v4397_v9 = vor.u32 %v3278_v56, %v2836_v58 }
 0x135   : > { %v1663_v37 = vpack.c.bf16 %v1246_v30, %v1246_v30  ;;  %v4399_v30 = vor.u32 %v3281_v19, %v2842_v59 }
 0x137   : > { %1696 = vst.msk [vmem:[#allocation2 + $0x30] sm:$0xf] %vm1683_vm0, %v1663_v37  ;;  %1772 = vrot.lane.b32.xlu0 %v1663_v37, %s3579_s23 }
 0x138   : > { %v1158_v6 = vpop.f32.mrf.mxu2  ;;  %v983_v5 = vpop.f32.mrf.mxu0 }
 0x139   : > { %v1159_v22 = vadd.f32 %v1158_v6, %v1070_v8  ;;  %v1247_v10 = vpop.f32.mrf.mxu3  ;;  %v1072_v16 = vpop.f32.mrf.mxu1 }
 0x13a   : > { %v1073_v62 = vadd.f32 %v1072_v16, %v983_v5 }
 0x13b   : > { %v1248_v60 = vadd.f32 %v1247_v10, %v1159_v22  ;;  %1022 = vmatmul.bf16.gmra.mxu0 %v4395_v36 }
 0x13c   : > { %1111 = vmatmul.bf16.gmra.mxu1 %v4397_v9 }
 0x13d   : > { %v1664_v28 = vpack.c.bf16 %v1248_v60, %v1248_v60  ;;  %1200 = vmatmul.bf16.gmra.mxu2 %v4399_v30 }
 0x13e   : > { %1289 = vmatmul.bf16.gmra.mxu3 %v4401_v18 }
 0x13f   : > { %1697 = vst.msk [vmem:[#allocation2 + $0x34] sm:$0xf] %vm1683_vm0, %v1664_v28  ;;  %1774 = vrot.lane.b32.xlu1 %v1664_v28, %s3579_s23 }
 0x140   : > { %v1161_v37 = vpop.f32.mrf.mxu2  ;;  %v985_v56 = vpop.f32.mrf.mxu0 }
 0x141   : > { %v1162_v38 = vadd.f32 %v1161_v37, %v1073_v62  ;;  %v1250_v39 = vpop.f32.mrf.mxu3  ;;  %v1074_v58 = vpop.f32.mrf.mxu1 }
 0x142   : > { %v1075_v60 = vadd.f32 %v1074_v58, %v985_v56 }
 0x143   : > { %v1251_v10 = vadd.f32 %v1250_v39, %v1162_v38 }
 0x145   : > { %v1665_v59 = vpack.c.bf16 %v1251_v10, %v1251_v10 }
 0x147   : > { %1698 = vst.msk [vmem:[#allocation2 + $0x38] sm:$0xf] %vm1683_vm0, %v1665_v59  ;;  %1776 = vrot.lane.b32.xlu2 %v1665_v59, %s3579_s23 }
 0x148   : > { %v1163_v16 = vpop.f32.mrf.mxu2  ;;  %v988_v29 = vpop.f32.mrf.mxu0 }
 0x149   : > { %v1164_v19 = vadd.f32 %v1163_v16, %v1075_v60  ;;  %v1252_v8 = vpop.f32.mrf.mxu3  ;;  %v1749_v11 = vpop.permute.xlu0 %1748 }
 0x14a   : > { %1844 = vst.msk [vmem:[#allocation3] sm:$0xf] %vm1683_vm0, %v1749_v11  ;;  %v1077_v6 = vpop.f32.mrf.mxu1 }
 0x14b   : > { %v1253_v22 = vadd.f32 %v1252_v8, %v1164_v19  ;;  %1303 = vmatmul.bf16.vlgmr.msrb.gmra.mxu0 %v3895_v47  ;;  %v1078_v28 = vadd.f32 %v1077_v6, %v988_v29 }
 0x14c   : > { %1392 = vmatmul.bf16.vlgmr.msrb.gmra.mxu1 %v3903_v51 }
 0x14d   : > { %v1666_v5 = vpack.c.bf16 %v1253_v22, %v1253_v22  ;;  %1481 = vmatmul.bf16.vlgmr.msrb.gmra.mxu2 %v3905_v52 }
 0x14e   : > { %1570 = vmatmul.bf16.vlgmr.msrb.gmra.mxu3 %v3907_v53 }
 0x14f   : > { %1699 = vst.msk [vmem:[#allocation2 + $0x3c] sm:$0xf] %vm1683_vm0, %v1666_v5  ;;  %1778 = vrot.lane.b32.xlu0 %v1666_v5, %s3579_s23 }
 0x150   : > { %v1166_v62 = vpop.f32.mrf.mxu2  ;;  %v990_v47 = vpop.f32.mrf.mxu0 }
 0x151   : > { %v1167_v37 = vadd.f32 %v1166_v62, %v1078_v28  ;;  %v1255_v38 = vpop.f32.mrf.mxu3  ;;  %v1757_v39 = vpop.permute.xlu2 %1756 }
 0x152   : > { %1848 = vst.msk [vmem:[#allocation3 + $0x10] sm:$0xf] %vm1683_vm0, %v1757_v39  ;;  %v1751_v56 = vpop.permute.xlu0 %1750  ;;  %v1079_v51 = vpop.f32.mrf.mxu1 }
 0x153   : > { %v1256_v58 = vadd.f32 %v1255_v38, %v1167_v37  ;;  %1845 = vst.msk [vmem:[#allocation3 + $0x4] sm:$0xf] %vm1683_vm0, %v1751_v56  ;;  %v1080_v52 = vadd.f32 %v1079_v51, %v990_v47 }
 0x155   : > { %v1667_v10 = vpack.c.bf16 %v1256_v58, %v1256_v58 }
 0x157   : > { %1700 = vst.msk [vmem:[#allocation2 + $0x40] sm:$0xf] %vm1683_vm0, %v1667_v10  ;;  %1780 = vrot.lane.b32.xlu1 %v1667_v10, %s3579_s23 }
 0x158   : > { %v1168_v53 = vpop.f32.mrf.mxu2  ;;  %v993_v8 = vpop.f32.mrf.mxu0 }
 0x159   : > { %v1169_v59 = vadd.f32 %v1168_v53, %v1080_v52  ;;  %v1257_v60 = vpop.f32.mrf.mxu3  ;;  %v1759_v16 = vpop.permute.xlu2 %1758 }
 0x15a   : > { %1849 = vst.msk [vmem:[#allocation3 + $0x14] sm:$0xf] %vm1683_vm0, %v1759_v16  ;;  %v1753_v19 = vpop.permute.xlu1 %1752  ;;  %v1082_v29 = vpop.f32.mrf.mxu1 }
 0x15b   : > { %v1258_v11 = vadd.f32 %v1257_v60, %v1169_v59  ;;  %1846 = vst.msk [vmem:[#allocation3 + $0x8] sm:$0xf] %vm1683_vm0, %v1753_v19  ;;  %1308 = vmatmul.bf16.gmra.mxu0 %v3945_v12  ;;  %v1083_v22 = vadd.f32 %v1082_v29, %v993_v8 }
 0x15c   : > { %1397 = vmatmul.bf16.gmra.mxu1 %v3947_v13 }
 0x15d   : > { %v1668_v6 = vpack.c.bf16 %v1258_v11, %v1258_v11  ;;  %1486 = vmatmul.bf16.gmra.mxu2 %v3949_v14 }
 0x15e   : > { %1575 = vmatmul.bf16.gmra.mxu3 %v3951_v15 }
 0x15f   : > { %1701 = vst.msk [vmem:[#allocation2 + $0x44] sm:$0xf] %vm1683_vm0, %v1668_v6  ;;  %1782 = vrot.lane.b32.xlu2 %v1668_v6, %s3579_s23 }
 0x160   : > { %v1171_v5 = vpop.f32.mrf.mxu2  ;;  %v995_v38 = vpop.f32.mrf.mxu0 }
 0x161   : > { %v1172_v28 = vadd.f32 %v1171_v5, %v1083_v22  ;;  %v1260_v62 = vpop.f32.mrf.mxu3 }
 0x162   : > { %v1755_v37 = vpop.permute.xlu1 %1754  ;;  %v1084_v12 = vpop.f32.mrf.mxu1 }
 0x163   : > { %v1261_v39 = vadd.f32 %v1260_v62, %v1172_v28  ;;  %1847 = vst.msk [vmem:[#allocation3 + $0xc] sm:$0xf] %vm1683_vm0, %v1755_v37  ;;  %v1085_v13 = vadd.f32 %v1084_v12, %v995_v38 }
 0x165   : > { %v1669_v56 = vpack.c.bf16 %v1261_v39, %v1261_v39 }
 0x167   : > { %1702 = vst.msk [vmem:[#allocation2 + $0x48] sm:$0xf] %vm1683_vm0, %v1669_v56  ;;  %1784 = vrot.lane.b32.xlu0 %v1669_v56, %s3579_s23 }
 0x168   : > { %v1173_v14 = vpop.f32.mrf.mxu2  ;;  %v998_v58 = vpop.f32.mrf.mxu0 }
 0x169   : > { %v1174_v15 = vadd.f32 %v1173_v14, %v1085_v13  ;;  %v1262_v47 = vpop.f32.mrf.mxu3 }
 0x16a   : > { %v1087_v10 = vpop.f32.mrf.mxu1 }
 0x16b   : > { %v1263_v51 = vadd.f32 %v1262_v47, %v1174_v15  ;;  %1313 = vmatmul.bf16.gmra.mxu0 %v3965_v24  ;;  %v1088_v53 = vadd.f32 %v1087_v10, %v998_v58 }
 0x16c   : > { %1402 = vmatmul.bf16.gmra.mxu1 %v3967_v25 }
 0x16d   : > { %v1670_v52 = vpack.c.bf16 %v1263_v51, %v1263_v51  ;;  %1491 = vmatmul.bf16.gmra.mxu2 %v3969_v26 }
 0x16e   : > { %1580 = vmatmul.bf16.gmra.mxu3 %v3971_v27 }
 0x16f   : > { %1703 = vst.msk [vmem:[#allocation2 + $0x4c] sm:$0xf] %vm1683_vm0, %v1670_v52  ;;  %1786 = vrot.lane.b32.xlu1 %v1670_v52, %s3579_s23 }
 0x170   : > { %v1176_v59 = vpop.f32.mrf.mxu2  ;;  %v1000_v8 = vpop.f32.mrf.mxu0 }
 0x171   : > { %v1177_v60 = vadd.f32 %v1176_v59, %v1088_v53  ;;  %v1265_v16 = vpop.f32.mrf.mxu3  ;;  %v1765_v19 = vpop.permute.xlu2 %1764 }
 0x172   : > { %1852 = vst.msk [vmem:[#allocation3 + $0x20] sm:$0xf] %vm1683_vm0, %v1765_v19  ;;  %v1089_v11 = vpop.f32.mrf.mxu1 }
 0x173   : > { %v1266_v24 = vadd.f32 %v1265_v16, %v1177_v60  ;;  %v1090_v25 = vadd.f32 %v1089_v11, %v1000_v8 }
 0x175   : > { %v1671_v29 = vpack.c.bf16 %v1266_v24, %v1266_v24 }
 0x177   : > { %1704 = vst.msk [vmem:[#allocation2 + $0x50] sm:$0xf] %vm1683_vm0, %v1671_v29  ;;  %1788 = vrot.lane.b32.xlu2 %v1671_v29, %s3579_s23 }
 0x178   : > { %v1178_v26 = vpop.f32.mrf.mxu2  ;;  %v1003_v5 = vpop.f32.mrf.mxu0 }
 0x179   : > { %v1179_v27 = vadd.f32 %v1178_v26, %v1090_v25  ;;  %v1267_v6 = vpop.f32.mrf.mxu3  ;;  %v1761_v22 = vpop.permute.xlu0 %1760 }
 0x17a   : > { %1850 = vst.msk [vmem:[#allocation3 + $0x18] sm:$0xf] %vm1683_vm0, %v1761_v22  ;;  %v1092_v62 = vpop.f32.mrf.mxu1 }
 0x17b   : > { %v1268_v28 = vadd.f32 %v1267_v6, %v1179_v27  ;;  %1318 = vmatmul.bf16.gmra.mxu0 %v4009_v49  ;;  %v1093_v38 = vadd.f32 %v1092_v62, %v1003_v5 }
 0x17c   : > { %1407 = vmatmul.bf16.gmra.mxu1 %v4011_v50 }
 0x17d   : > { %v1672_v37 = vpack.c.bf16 %v1268_v28, %v1268_v28  ;;  %1496 = vmatmul.bf16.gmra.mxu2 %v4013_v54 }
 0x17e   : > { %1585 = vmatmul.bf16.gmra.mxu3 %v4015_v55 }
 0x17f   : > { %1705 = vst.msk [vmem:[#allocation2 + $0x54] sm:$0xf] %vm1683_vm0, %v1672_v37  ;;  %1790 = vrot.lane.b32.xlu0 %v1672_v37, %s3579_s23 }
 0x180   : > { %v1181_v39 = vpop.f32.mrf.mxu2  ;;  %v1005_v14 = vpop.f32.mrf.mxu0 }
 0x181   : > { %v1182_v12 = vadd.f32 %v1181_v39, %v1093_v38  ;;  %v1270_v56 = vpop.f32.mrf.mxu3  ;;  %v1763_v13 = vpop.permute.xlu1 %1762 }
 0x182   : > { %1851 = vst.msk [vmem:[#allocation3 + $0x1c] sm:$0xf] %vm1683_vm0, %v1763_v13  ;;  %v1094_v15 = vpop.f32.mrf.mxu1 }
 0x183   : > { %v1271_v49 = vadd.f32 %v1270_v56, %v1182_v12  ;;  %v1095_v50 = vadd.f32 %v1094_v15, %v1005_v14 }
 0x185   : > { %v1673_v47 = vpack.c.bf16 %v1271_v49, %v1271_v49 }
 0x187   : > { %1706 = vst.msk [vmem:[#allocation2 + $0x58] sm:$0xf] %vm1683_vm0, %v1673_v47  ;;  %1792 = vrot.lane.b32.xlu1 %v1673_v47, %s3579_s23 }
 0x188   : > { %v1183_v54 = vpop.f32.mrf.mxu2  ;;  %v1008_v10 = vpop.f32.mrf.mxu0 }
 0x189   : > { %v1184_v55 = vadd.f32 %v1183_v54, %v1095_v50  ;;  %v1272_v58 = vpop.f32.mrf.mxu3  ;;  %v1771_v51 = vpop.permute.xlu2 %1770 }
 0x18a   : > { %1855 = vst.msk [vmem:[#allocation3 + $0x2c] sm:$0xf] %vm1683_vm0, %v1771_v51  ;;  %v1097_v53 = vpop.f32.mrf.mxu1 }
 0x18b   : > { %v1273_v52 = vadd.f32 %v1272_v58, %v1184_v55  ;;  %1323 = vmatmul.bf16.gmra.mxu0 %v4029_v0  ;;  %v1098_v60 = vadd.f32 %v1097_v53, %v1008_v10 }
 0x18c   : > { %1412 = vmatmul.bf16.gmra.mxu1 %v4031_v1 }
 0x18d   : > { %v1674_v59 = vpack.c.bf16 %v1273_v52, %v1273_v52  ;;  %1501 = vmatmul.bf16.gmra.mxu2 %v4033_v2 }
 0x18e   : > { %1590 = vmatmul.bf16.gmra.mxu3 %v4035_v3 }
 0x18f   : > { %1707 = vst.msk [vmem:[#allocation2 + $0x5c] sm:$0xf] %vm1683_vm0, %v1674_v59  ;;  %1794 = vrot.lane.b32.xlu2 %v1674_v59, %s3579_s23 }
 0x190   : > { %v1186_v16 = vpop.f32.mrf.mxu2  ;;  %v1010_v11 = vpop.f32.mrf.mxu0 }
 0x191   : > { %v1187_v19 = vadd.f32 %v1186_v16, %v1098_v60  ;;  %v1275_v8 = vpop.f32.mrf.mxu3  ;;  %v1767_v24 = vpop.permute.xlu0 %1766 }
 0x192   : > { %1853 = vst.msk [vmem:[#allocation3 + $0x24] sm:$0xf] %vm1683_vm0, %v1767_v24  ;;  %v1099_v29 = vpop.f32.mrf.mxu1 }
 0x193   : > { %v1276_v0 = vadd.f32 %v1275_v8, %v1187_v19  ;;  %v1100_v1 = vadd.f32 %v1099_v29, %v1010_v11 }
 0x195   : > { %v1675_v25 = vpack.c.bf16 %v1276_v0, %v1276_v0 }
 0x197   : > { %1708 = vst.msk [vmem:[#allocation2 + $0x60] sm:$0xf] %vm1683_vm0, %v1675_v25  ;;  %1796 = vrot.lane.b32.xlu0 %v1675_v25, %s3579_s23 }
 0x198   : > { %v1188_v2 = vpop.f32.mrf.mxu2  ;;  %v1013_v6 = vpop.f32.mrf.mxu0 }
 0x199   : > { %v1189_v3 = vadd.f32 %v1188_v2, %v1100_v1  ;;  %v1277_v26 = vpop.f32.mrf.mxu3  ;;  %v1769_v27 = vpop.permute.xlu1 %1768 }
 0x19a   : > { %1854 = vst.msk [vmem:[#allocation3 + $0x28] sm:$0xf] %vm1683_vm0, %v1769_v27  ;;  %v1102_v5 = vpop.f32.mrf.mxu1 }
 0x19b   : > { %v1278_v22 = vadd.f32 %v1277_v26, %v1189_v3  ;;  %1328 = vmatmul.bf16.gmra.mxu0 %v4073_v32  ;;  %v1103_v62 = vadd.f32 %v1102_v5, %v1013_v6 }
 0x19c   : > { %1417 = vmatmul.bf16.gmra.mxu1 %v4075_v33 }
 0x19d   : > { %v1676_v28 = vpack.c.bf16 %v1278_v22, %v1278_v22  ;;  %1506 = vmatmul.bf16.gmra.mxu2 %v4077_v34 }
 0x19e   : > { %1595 = vmatmul.bf16.gmra.mxu3 %v4079_v35 }
 0x19f   : > { %1709 = vst.msk [vmem:[#allocation2 + $0x64] sm:$0xf] %vm1683_vm0, %v1676_v28  ;;  %1798 = vrot.lane.b32.xlu1 %v1676_v28, %s3579_s23 }
 0x1a0   : > { %v1191_v37 = vpop.f32.mrf.mxu2  ;;  %v1015_v56 = vpop.f32.mrf.mxu0 }
 0x1a1   : > { %v1192_v38 = vadd.f32 %v1191_v37, %v1103_v62  ;;  %v1280_v39 = vpop.f32.mrf.mxu3  ;;  %v1777_v12 = vpop.permute.xlu2 %1776 }
 0x1a2   : > { %1858 = vst.msk [vmem:[#allocation3 + $0x38] sm:$0xf] %vm1683_vm0, %v1777_v12  ;;  %v1104_v13 = vpop.f32.mrf.mxu1 }
 0x1a3   : > { %v1281_v32 = vadd.f32 %v1280_v39, %v1192_v38  ;;  %v1105_v33 = vadd.f32 %v1104_v13, %v1015_v56 }
 0x1a5   : > { %v1677_v14 = vpack.c.bf16 %v1281_v32, %v1281_v32 }
 0x1a7   : > { %1710 = vst.msk [vmem:[#allocation2 + $0x68] sm:$0xf] %vm1683_vm0, %v1677_v14  ;;  %1800 = vrot.lane.b32.xlu2 %v1677_v14, %s3579_s23 }
 0x1a8   : > { %v1193_v34 = vpop.f32.mrf.mxu2  ;;  %v1018_v47 = vpop.f32.mrf.mxu0 }
 0x1a9   : > { %v1194_v35 = vadd.f32 %v1193_v34, %v1105_v33  ;;  %v1282_v49 = vpop.f32.mrf.mxu3  ;;  %v1773_v15 = vpop.permute.xlu0 %1772 }
 0x1aa   : > { %1856 = vst.msk [vmem:[#allocation3 + $0x30] sm:$0xf] %vm1683_vm0, %v1773_v15  ;;  %v1107_v54 = vpop.f32.mrf.mxu1 }
 0x1ab   : > { %v1283_v50 = vadd.f32 %v1282_v49, %v1194_v35  ;;  %1333 = vmatmul.bf16.gmra.mxu0 %v4093_v44  ;;  %v1108_v58 = vadd.f32 %v1107_v54, %v1018_v47 }
 0x1ac   : > { %1422 = vmatmul.bf16.gmra.mxu1 %v4095_v45 }
 0x1ad   : > { %v1678_v55 = vpack.c.bf16 %v1283_v50, %v1283_v50  ;;  %1511 = vmatmul.bf16.gmra.mxu2 %v4097_v46 }
 0x1ae   : > { %1600 = vmatmul.bf16.gmra.mxu3 %v4099_v48 }
 0x1af   : > { %1711 = vst.msk [vmem:[#allocation2 + $0x6c] sm:$0xf] %vm1683_vm0, %v1678_v55  ;;  %1802 = vrot.lane.b32.xlu0 %v1678_v55, %s3579_s23 }
 0x1b0   : > { %v1196_v51 = vpop.f32.mrf.mxu2  ;;  %v1020_v59 = vpop.f32.mrf.mxu0 }
 0x1b1   : > { %v1197_v10 = vadd.f32 %v1196_v51, %v1108_v58  ;;  %v1285_v52 = vpop.f32.mrf.mxu3  ;;  %v1775_v53 = vpop.permute.xlu1 %1774 }
 0x1b2   : > { %1857 = vst.msk [vmem:[#allocation3 + $0x34] sm:$0xf] %vm1683_vm0, %v1775_v53  ;;  %v1109_v60 = vpop.f32.mrf.mxu1 }
 0x1b3   : > { %v1286_v44 = vadd.f32 %v1285_v52, %v1197_v10  ;;  %v1110_v45 = vadd.f32 %v1109_v60, %v1020_v59 }
 0x1b5   : > { %v1679_v16 = vpack.c.bf16 %v1286_v44, %v1286_v44 }
 0x1b7   : > { %1712 = vst.msk [vmem:[#allocation2 + $0x70] sm:$0xf] %vm1683_vm0, %v1679_v16  ;;  %1804 = vrot.lane.b32.xlu1 %v1679_v16, %s3579_s23 }
 0x1b8   : > { %v1198_v46 = vpop.f32.mrf.mxu2  ;;  %v1023_v24 = vpop.f32.mrf.mxu0 }
 0x1b9   : > { %v1199_v48 = vadd.f32 %v1198_v46, %v1110_v45  ;;  %v1287_v19 = vpop.f32.mrf.mxu3  ;;  %v1783_v8 = vpop.permute.xlu2 %1782 }
 0x1ba   : > { %1861 = vst.msk [vmem:[#allocation3 + $0x44] sm:$0xf] %vm1683_vm0, %v1783_v8  ;;  %v1112_v0 = vpop.f32.mrf.mxu1 }
 0x1bb   : > { %v1288_v11 = vadd.f32 %v1287_v19, %v1199_v48  ;;  %1338 = vmatmul.bf16.gmra.mxu0 %v4134_v17  ;;  %v1113_v25 = vadd.f32 %v1112_v0, %v1023_v24  ;;  %v4934_v0 = vld [vmem:[#allocation9_spill] sm:$0xff] }
 0x1bc   : > { %1427 = vmatmul.bf16.gmra.mxu1 %v4139_v20 }
 0x1bd   : > { %v1680_v29 = vpack.c.bf16 %v1288_v11, %v1288_v11  ;;  %1516 = vmatmul.bf16.gmra.mxu2 %v4141_v21  ;;  %v4933_v11 = vld [vmem:[#allocation8_spill] sm:$0xff] }
 0x1be   : > { %1605 = vmatmul.bf16.gmra.mxu3 %v4143_v23 }
 0x1bf   : > { %1713 = vst.msk [vmem:[#allocation2 + $0x74] sm:$0xf] %vm1683_vm0, %v1680_v29  ;;  %1806 = vrot.lane.b32.xlu2 %v1680_v29, %s3579_s23  ;;  %v4935_v29 = vld [vmem:[#allocation10_spill] sm:$0xff] }
 0x1c0   : > { %v1201_v1 = vpop.f32.mrf.mxu2  ;;  %v1025_v27 = vpop.f32.mrf.mxu0 }
 0x1c1   : > { %v1202_v2 = vadd.f32 %v1201_v1, %v1113_v25  ;;  %v1290_v3 = vpop.f32.mrf.mxu3  ;;  %v1779_v26 = vpop.permute.xlu0 %1778 }
 0x1c2   : > { %1859 = vst.msk [vmem:[#allocation3 + $0x3c] sm:$0xf] %vm1683_vm0, %v1779_v26  ;;  %v1114_v6 = vpop.f32.mrf.mxu1 }
 0x1c3   : > { %v1291_v17 = vadd.f32 %v1290_v3, %v1202_v2  ;;  %v1115_v20 = vadd.f32 %v1114_v6, %v1025_v27 }
 0x1c5   : > { %v1681_v22 = vpack.c.bf16 %v1291_v17, %v1291_v17 }
 0x1c7   : > { %1714 = vst.msk [vmem:[#allocation2 + $0x78] sm:$0xf] %vm1683_vm0, %v1681_v22  ;;  %1808 = vrot.lane.b32.xlu0 %v1681_v22, %s3579_s23 }
 0x1c8   : > { %v1203_v21 = vpop.f32.mrf.mxu2  ;;  %v1304_v62 = vpop.f32.mrf.mxu0 }
 0x1c9   : > { %v1204_v23 = vadd.f32 %v1203_v21, %v1115_v20  ;;  %v1292_v5 = vpop.f32.mrf.mxu3  ;;  %v1781_v28 = vpop.permute.xlu1 %1780 }
 0x1ca   : > { %1860 = vst.msk [vmem:[#allocation3 + $0x40] sm:$0xf] %vm1683_vm0, %v1781_v28  ;;  %v1393_v38 = vpop.f32.mrf.mxu1 }
 0x1cb   : > { %v1293_v37 = vadd.f32 %v1292_v5, %v1204_v23  ;;  %1343 = vmatmul.bf16.gmra.mxu0 %v4157_v40  ;;  %v1394_v12 = vadd.f32 %v1393_v38, %v1304_v62 }
 0x1cc   : > { %1432 = vmatmul.bf16.gmra.mxu1 %v4159_v42 }
 0x1cd   : > { %v1682_v39 = vpack.c.bf16 %v1293_v37, %v1293_v37  ;;  %1521 = vmatmul.bf16.gmra.mxu2 %v4161_v43  ;;  %v4936_v37 = vld [vmem:[#allocation11_spill] sm:$0xff] }
 0x1ce   : > { %1610 = vmatmul.bf16.gmra.mxu3 %v4163_v57 }
 0x1cf   : > { %1715 = vst.msk [vmem:[#allocation2 + $0x7c] sm:$0xf] %vm1683_vm0, %v1682_v39  ;;  %1810 = vrot.lane.b32.xlu1 %v1682_v39, %s3579_s23 }
 0x1d0   : > { %v1482_v56 = vpop.f32.mrf.mxu2  ;;  %v1306_v33 = vpop.f32.mrf.mxu0 }
 0x1d1   : > { %v1483_v32 = vadd.f32 %v1482_v56, %v1394_v12  ;;  %v1571_v13 = vpop.f32.mrf.mxu3  ;;  %v1789_v14 = vpop.permute.xlu2 %1788  ;;  %v4937_v12 = vld [vmem:[#allocation12_spill] sm:$0xff]  ;;  %v4938_v56 = vld [vmem:[#allocation13_spill] sm:$0xff] }
 0x1d2   : > { %1864 = vst.msk [vmem:[#allocation3 + $0x50] sm:$0xf] %vm1683_vm0, %v1789_v14  ;;  %v1395_v34 = vpop.f32.mrf.mxu1 }
 0x1d3   : > { %v1572_v40 = vadd.f32 %v1571_v13, %v1483_v32  ;;  %v1396_v42 = vadd.f32 %v1395_v34, %v1306_v33  ;;  %v4939_v32 = vld [vmem:[#allocation14_spill] sm:$0xff] }
 0x1d5   : > { %v1876_v35 = vpack.c.bf16 %v1572_v40, %v1572_v40 }
 0x1d7   : > { %1908 = vst.msk [vmem:[#allocation4] sm:$0xf] %vm1683_vm0, %v1876_v35 }
 0x1d8   : > { %v1484_v43 = vpop.f32.mrf.mxu2  ;;  %v1309_v47 = vpop.f32.mrf.mxu0 }
 0x1d9   : > { %v1485_v49 = vadd.f32 %v1484_v43, %v1396_v42  ;;  %v1573_v57 = vpop.f32.mrf.mxu3  ;;  %v1785_v15 = vpop.permute.xlu0 %1784 }
 0x1da   : > { %1862 = vst.msk [vmem:[#allocation3 + $0x48] sm:$0xf] %vm1683_vm0, %v1785_v15  ;;  %v1398_v54 = vpop.f32.mrf.mxu1 }
 0x1db   : > { %v1574_v50 = vadd.f32 %v1573_v57, %v1485_v49  ;;  %1348 = vmatmul.bf16.gmra.mxu0 %v4197_v41  ;;  %v1399_v58 = vadd.f32 %v1398_v54, %v1309_v47 }
 0x1dc   : > { %1437 = vmatmul.bf16.gmra.mxu1 %v4205_v63 }
 0x1dd   : > { %v1877_v55 = vpack.c.bf16 %v1574_v50, %v1574_v50  ;;  %1526 = vmatmul.bf16.gmra.mxu2 %v4207_v4 }
 0x1de   : > { %1615 = vmatmul.bf16.gmra.mxu3 %v4209_v7 }
 0x1df   : > { %1909 = vst.msk [vmem:[#allocation4 + $0x4] sm:$0xf] %vm1683_vm0, %v1877_v55 }
 0x1e0   : > { %v1487_v51 = vpop.f32.mrf.mxu2  ;;  %v1311_v59 = vpop.f32.mrf.mxu0 }
 0x1e1   : > { %v1488_v10 = vadd.f32 %v1487_v51, %v1399_v58  ;;  %v1576_v52 = vpop.f32.mrf.mxu3  ;;  %v1787_v53 = vpop.permute.xlu1 %1786  ;;  %v4940_v51 = vld [vmem:[#allocation15_spill] sm:$0xff] }
 0x1e2   : > { %1863 = vst.msk [vmem:[#allocation3 + $0x4c] sm:$0xf] %vm1683_vm0, %v1787_v53  ;;  %v1400_v60 = vpop.f32.mrf.mxu1  ;;  %v4941_v53 = vld [vmem:[#allocation16_spill] sm:$0xff] }
 0x1e3   : > { %v1577_v44 = vadd.f32 %v1576_v52, %v1488_v10  ;;  %v1401_v16 = vadd.f32 %v1400_v60, %v1311_v59  ;;  %v4942_v59 = vld [vmem:[#allocation17_spill] sm:$0xff] }
 0x1e5   : > { %v1878_v41 = vpack.c.bf16 %v1577_v44, %v1577_v44  ;;  %v4943_v44 = vld [vmem:[#allocation18_spill] sm:$0xff] }
 0x1e7   : > { %1910 = vst.msk [vmem:[#allocation4 + $0x8] sm:$0xf] %vm1683_vm0, %v1878_v41 }
 0x1e8   : > { %v1489_v63 = vpop.f32.mrf.mxu2  ;;  %v1314_v7 = vpop.f32.mrf.mxu0 }
 0x1e9   : > { %v1490_v45 = vadd.f32 %v1489_v63, %v1401_v16  ;;  %v1578_v4 = vpop.f32.mrf.mxu3  ;;  %v1795_v46 = vpop.permute.xlu2 %1794 }
 0x1ea   : > { %1867 = vst.msk [vmem:[#allocation3 + $0x5c] sm:$0xf] %vm1683_vm0, %v1795_v46  ;;  %v1403_v19 = vpop.f32.mrf.mxu1 }
 0x1eb   : > { %v1579_v48 = vadd.f32 %v1578_v4, %v1490_v45  ;;  %1353 = vmatmul.bf16.gmra.mxu0 %v4227_v61  ;;  %v1404_v24 = vadd.f32 %v1403_v19, %v1314_v7 }
 0x1ec   : > { %1442 = vmatmul.bf16.gmra.mxu1 %v4933_v11 }
 0x1ed   : > { %v1879_v8 = vpack.c.bf16 %v1579_v48, %v1579_v48  ;;  %1531 = vmatmul.bf16.gmra.mxu2 %v4934_v0 }
 0x1ee   : > { %1620 = vmatmul.bf16.gmra.mxu3 %v4935_v29 }
 0x1ef   : > { %1911 = vst.msk [vmem:[#allocation4 + $0xc] sm:$0xf] %vm1683_vm0, %v1879_v8 }
 0x1f0   : > { %v1492_v25 = vpop.f32.mrf.mxu2  ;;  %v1316_v26 = vpop.f32.mrf.mxu0 }
 0x1f1   : > { %v1493_v1 = vadd.f32 %v1492_v25, %v1404_v24  ;;  %v1581_v2 = vpop.f32.mrf.mxu3  ;;  %v1791_v3 = vpop.permute.xlu0 %1790 }
 0x1f2   : > { %1865 = vst.msk [vmem:[#allocation3 + $0x54] sm:$0xf] %vm1683_vm0, %v1791_v3  ;;  %v1405_v17 = vpop.f32.mrf.mxu1  ;;  %v4944_v3 = vld [vmem:[#allocation19_spill] sm:$0xff] }
 0x1f3   : > { %v1582_v27 = vadd.f32 %v1581_v2, %v1493_v1  ;;  %v1406_v6 = vadd.f32 %v1405_v17, %v1316_v26  ;;  %v4945_v26 = vld [vmem:[#allocation20_spill] sm:$0xff] }
 0x1f5   : > { %v1880_v61 = vpack.c.bf16 %v1582_v27, %v1582_v27  ;;  %v4946_v27 = vld [vmem:[#allocation21_spill] sm:$0xff] }
 0x1f7   : > { %1912 = vst.msk [vmem:[#allocation4 + $0x10] sm:$0xf] %vm1683_vm0, %v1880_v61 }
 0x1f8   : > { %v1494_v22 = vpop.f32.mrf.mxu2  ;;  %v1319_v5 = vpop.f32.mrf.mxu0 }
 0x1f9   : > { %v1495_v20 = vadd.f32 %v1494_v22, %v1406_v6  ;;  %v1583_v21 = vpop.f32.mrf.mxu3  ;;  %v1793_v23 = vpop.permute.xlu1 %1792 }
 0x1fa   : > { %1866 = vst.msk [vmem:[#allocation3 + $0x58] sm:$0xf] %vm1683_vm0, %v1793_v23  ;;  %v1408_v62 = vpop.f32.mrf.mxu1 }
 0x1fb   : > { %v1584_v28 = vadd.f32 %v1583_v21, %v1495_v20  ;;  %1358 = vmatmul.bf16.gmra.mxu0 %v4936_v37  ;;  %v1409_v39 = vadd.f32 %v1408_v62, %v1319_v5 }
 0x1fc   : > { %1447 = vmatmul.bf16.gmra.mxu1 %v4937_v12 }
 0x1fd   : > { %v1881_v38 = vpack.c.bf16 %v1584_v28, %v1584_v28  ;;  %1536 = vmatmul.bf16.gmra.mxu2 %v4938_v56 }
 0x1fe   : > { %1625 = vmatmul.bf16.gmra.mxu3 %v4939_v32  ;;  %v4947_v32 = vld [vmem:[#allocation22_spill] sm:$0xff] }
 0x1ff   : > { %1913 = vst.msk [vmem:[#allocation4 + $0x14] sm:$0xf] %vm1683_vm0, %v1881_v38 }
 0x200   : > { %v1497_v13 = vpop.f32.mrf.mxu2  ;;  %v1321_v34 = vpop.f32.mrf.mxu0 }
 0x201   : > { %v1498_v14 = vadd.f32 %v1497_v13, %v1409_v39  ;;  %v1586_v33 = vpop.f32.mrf.mxu3  ;;  %v1801_v40 = vpop.permute.xlu2 %1800 }
 0x202   : > { %1870 = vst.msk [vmem:[#allocation3 + $0x68] sm:$0xf] %vm1683_vm0, %v1801_v40  ;;  %v1410_v42 = vpop.f32.mrf.mxu1  ;;  %v4949_v40 = vld [vmem:[#allocation24_spill] sm:$0xff] }
 0x203   : > { %v1587_v35 = vadd.f32 %v1586_v33, %v1498_v14  ;;  %v1411_v49 = vadd.f32 %v1410_v42, %v1321_v34  ;;  %v4948_v33 = vld [vmem:[#allocation23_spill] sm:$0xff]  ;;  %v4950_v34 = vld [vmem:[#allocation25_spill] sm:$0xff] }
 0x205   : > { %v1882_v43 = vpack.c.bf16 %v1587_v35, %v1587_v35 }
 0x207   : > { %1914 = vst.msk [vmem:[#allocation4 + $0x18] sm:$0xf] %vm1683_vm0, %v1882_v43 }
 0x208   : > { %v1499_v57 = vpop.f32.mrf.mxu2  ;;  %v1324_v54 = vpop.f32.mrf.mxu0 }
 0x209   : > { %v1500_v15 = vadd.f32 %v1499_v57, %v1411_v49  ;;  %v1588_v47 = vpop.f32.mrf.mxu3  ;;  %v1797_v50 = vpop.permute.xlu0 %1796 }
 0x20a   : > { %1868 = vst.msk [vmem:[#allocation3 + $0x60] sm:$0xf] %vm1683_vm0, %v1797_v50  ;;  %v1413_v58 = vpop.f32.mrf.mxu1 }
 0x20b   : > { %v1589_v55 = vadd.f32 %v1588_v47, %v1500_v15  ;;  %1363 = vmatmul.bf16.gmra.mxu0 %v4940_v51  ;;  %v1414_v52 = vadd.f32 %v1413_v58, %v1324_v54 }
 0x20c   : > { %1452 = vmatmul.bf16.gmra.mxu1 %v4941_v53 }
 0x20d   : > { %v1883_v10 = vpack.c.bf16 %v1589_v55, %v1589_v55  ;;  %1541 = vmatmul.bf16.gmra.mxu2 %v4942_v59 }
 0x20e   : > { %1630 = vmatmul.bf16.gmra.mxu3 %v4943_v44 }
 0x20f   : > { %1915 = vst.msk [vmem:[#allocation4 + $0x1c] sm:$0xf] %vm1683_vm0, %v1883_v10 }
 0x210   : > { %v1502_v60 = vpop.f32.mrf.mxu2  ;;  %v1326_v45 = vpop.f32.mrf.mxu0 }
 0x211   : > { %v1503_v41 = vadd.f32 %v1502_v60, %v1414_v52  ;;  %v1591_v16 = vpop.f32.mrf.mxu3  ;;  %v1799_v63 = vpop.permute.xlu1 %1798 }
 0x212   : > { %1869 = vst.msk [vmem:[#allocation3 + $0x64] sm:$0xf] %vm1683_vm0, %v1799_v63  ;;  %v1415_v46 = vpop.f32.mrf.mxu1 }
 0x213   : > { %v1592_v4 = vadd.f32 %v1591_v16, %v1503_v41  ;;  %v1416_v48 = vadd.f32 %v1415_v46, %v1326_v45 }
 0x215   : > { %v1884_v7 = vpack.c.bf16 %v1592_v4, %v1592_v4 }
 0x217   : > { %1916 = vst.msk [vmem:[#allocation4 + $0x20] sm:$0xf] %vm1683_vm0, %v1884_v7 }
 0x218   : > { %v1504_v19 = vpop.f32.mrf.mxu2  ;;  %v1329_v0 = vpop.f32.mrf.mxu0 }
 0x219   : > { %v1505_v8 = vadd.f32 %v1504_v19, %v1416_v48  ;;  %v1593_v24 = vpop.f32.mrf.mxu3  ;;  %v1807_v11 = vpop.permute.xlu2 %1806 }
 0x21a   : > { %1873 = vst.msk [vmem:[#allocation3 + $0x74] sm:$0xf] %vm1683_vm0, %v1807_v11  ;;  %v1418_v25 = vpop.f32.mrf.mxu1 }
 0x21b   : > { %v1594_v29 = vadd.f32 %v1593_v24, %v1505_v8  ;;  %1368 = vmatmul.bf16.gmra.mxu0 %v4341_v31  ;;  %v1419_v2 = vadd.f32 %v1418_v25, %v1329_v0 }
 0x21c   : > { %1457 = vmatmul.bf16.gmra.mxu1 %v4944_v3 }
 0x21d   : > { %v1885_v1 = vpack.c.bf16 %v1594_v29, %v1594_v29  ;;  %1546 = vmatmul.bf16.gmra.mxu2 %v4945_v26 }
 0x21e   : > { %1635 = vmatmul.bf16.gmra.mxu3 %v4946_v27 }
 0x21f   : > { %1917 = vst.msk [vmem:[#allocation4 + $0x24] sm:$0xf] %vm1683_vm0, %v1885_v1 }
 0x220   : > { %v1507_v17 = vpop.f32.mrf.mxu2  ;;  %v1331_v20 = vpop.f32.mrf.mxu0 }
 0x221   : > { %v1508_v61 = vadd.f32 %v1507_v17, %v1419_v2  ;;  %v1596_v6 = vpop.f32.mrf.mxu3  ;;  %v1803_v22 = vpop.permute.xlu0 %1802 }
 0x222   : > { %1871 = vst.msk [vmem:[#allocation3 + $0x6c] sm:$0xf] %vm1683_vm0, %v1803_v22  ;;  %v1420_v23 = vpop.f32.mrf.mxu1 }
 0x223   : > { %v1597_v21 = vadd.f32 %v1596_v6, %v1508_v61  ;;  %v1421_v5 = vadd.f32 %v1420_v23, %v1331_v20 }
 0x225   : > { %v1886_v31 = vpack.c.bf16 %v1597_v21, %v1597_v21 }
 0x227   : > { %1918 = vst.msk [vmem:[#allocation4 + $0x28] sm:$0xf] %vm1683_vm0, %v1886_v31 }
 0x228   : > { %v1509_v28 = vpop.f32.mrf.mxu2  ;;  %v1334_v39 = vpop.f32.mrf.mxu0 }
 0x229   : > { %v1510_v62 = vadd.f32 %v1509_v28, %v1421_v5  ;;  %v1598_v37 = vpop.f32.mrf.mxu3  ;;  %v1805_v38 = vpop.permute.xlu1 %1804 }
 0x22a   : > { %1872 = vst.msk [vmem:[#allocation3 + $0x70] sm:$0xf] %vm1683_vm0, %v1805_v38  ;;  %v1423_v56 = vpop.f32.mrf.mxu1 }
 0x22b   : > { %v1599_v12 = vadd.f32 %v1598_v37, %v1510_v62  ;;  %1373 = vmatmul.bf16.gmra.mxu0 %v4947_v32  ;;  %v1424_v14 = vadd.f32 %v1423_v56, %v1334_v39 }
 0x22c   : > { %1462 = vmatmul.bf16.gmra.mxu1 %v4948_v33 }
 0x22d   : > { %v1887_v13 = vpack.c.bf16 %v1599_v12, %v1599_v12  ;;  %1551 = vmatmul.bf16.gmra.mxu2 %v4949_v40 }
 0x22e   : > { %1640 = vmatmul.bf16.gmra.mxu3 %v4950_v34 }
 0x22f   : > { %1919 = vst.msk [vmem:[#allocation4 + $0x2c] sm:$0xf] %vm1683_vm0, %v1887_v13 }
 0x230   : > { %v1512_v35 = vpop.f32.mrf.mxu2  ;;  %v1336_v49 = vpop.f32.mrf.mxu0 }
 0x231   : > { %v1513_v42 = vadd.f32 %v1512_v35, %v1424_v14  ;;  %v1601_v43 = vpop.f32.mrf.mxu3 }
 0x232   : > { %v1425_v15 = vpop.f32.mrf.mxu1 }
 0x233   : > { %v1602_v57 = vadd.f32 %v1601_v43, %v1513_v42  ;;  %v1426_v50 = vadd.f32 %v1425_v15, %v1336_v49 }
 0x235   : > { %v1888_v47 = vpack.c.bf16 %v1602_v57, %v1602_v57 }
 0x237   : > { %1920 = vst.msk [vmem:[#allocation4 + $0x30] sm:$0xf] %vm1683_vm0, %v1888_v47 }
 0x238   : > { %v1514_v54 = vpop.f32.mrf.mxu2  ;;  %v1339_v10 = vpop.f32.mrf.mxu0 }
 0x239   : > { %v1515_v55 = vadd.f32 %v1514_v54, %v1426_v50  ;;  %v1603_v58 = vpop.f32.mrf.mxu3  ;;  %v1809_v51 = vpop.permute.xlu0 %1808 }
 0x23a   : > { %1874 = vst.msk [vmem:[#allocation3 + $0x78] sm:$0xf] %vm1683_vm0, %v1809_v51  ;;  %v1428_v53 = vpop.f32.mrf.mxu1 }
 0x23b   : > { %v1604_v52 = vadd.f32 %v1603_v58, %v1515_v55  ;;  %1378 = vmatmul.bf16.gmra.mxu0 %v4395_v36  ;;  %v1429_v44 = vadd.f32 %v1428_v53, %v1339_v10 }
 0x23c   : > { %1467 = vmatmul.bf16.gmra.mxu1 %v4397_v9 }
 0x23d   : > { %v1889_v59 = vpack.c.bf16 %v1604_v52, %v1604_v52  ;;  %1556 = vmatmul.bf16.gmra.mxu2 %v4399_v30 }
 0x23e   : > { %1645 = vmatmul.bf16.gmra.mxu3 %v4401_v18 }
 0x23f   : > { %1921 = vst.msk [vmem:[#allocation4 + $0x34] sm:$0xf] %vm1683_vm0, %v1889_v59 }
 0x240   : > { %v1517_v60 = vpop.f32.mrf.mxu2  ;;  %v1341_v45 = vpop.f32.mrf.mxu0 }
 0x241   : > { %v1518_v41 = vadd.f32 %v1517_v60, %v1429_v44  ;;  %v1606_v16 = vpop.f32.mrf.mxu3  ;;  %v1811_v63 = vpop.permute.xlu1 %1810 }
 0x242   : > { %1875 = vst.msk [vmem:[#allocation3 + $0x7c] sm:$0xf] %vm1683_vm0, %v1811_v63  ;;  %v1430_v46 = vpop.f32.mrf.mxu1 }
 0x243   : > { %v1607_v4 = vadd.f32 %v1606_v16, %v1518_v41  ;;  %v1431_v7 = vadd.f32 %v1430_v46, %v1341_v45 }
 0x245   : > { %v1890_v36 = vpack.c.bf16 %v1607_v4, %v1607_v4 }
 0x247   : > { %1922 = vst.msk [vmem:[#allocation4 + $0x38] sm:$0xf] %vm1683_vm0, %v1890_v36 }
 0x248   : > { %v1519_v9 = vpop.f32.mrf.mxu2  ;;  %v1344_v19 = vpop.f32.mrf.mxu0 }
 0x249   : > { %v1520_v48 = vadd.f32 %v1519_v9, %v1431_v7  ;;  %v1608_v30 = vpop.f32.mrf.mxu3 }
 0x24a   : > { %v1433_v8 = vpop.f32.mrf.mxu1 }
 0x24b   : > { %v1609_v18 = vadd.f32 %v1608_v30, %v1520_v48  ;;  %v1434_v11 = vadd.f32 %v1433_v8, %v1344_v19 }
 0x24d   : > { %v1891_v24 = vpack.c.bf16 %v1609_v18, %v1609_v18 }
 0x24f   : > { %1923 = vst.msk [vmem:[#allocation4 + $0x3c] sm:$0xf] %vm1683_vm0, %v1891_v24 }
 0x250   : > { %v1522_v0 = vpop.f32.mrf.mxu2  ;;  %v1346_v1 = vpop.f32.mrf.mxu0 }
 0x251   : > { %v1523_v29 = vadd.f32 %v1522_v0, %v1434_v11  ;;  %v1611_v25 = vpop.f32.mrf.mxu3 }
 0x252   : > { %v1435_v3 = vpop.f32.mrf.mxu1 }
 0x253   : > { %v1612_v2 = vadd.f32 %v1611_v25, %v1523_v29  ;;  %v1436_v27 = vadd.f32 %v1435_v3, %v1346_v1 }
 0x255   : > { %v1892_v26 = vpack.c.bf16 %v1612_v2, %v1612_v2 }
 0x257   : > { %1924 = vst.msk [vmem:[#allocation4 + $0x40] sm:$0xf] %vm1683_vm0, %v1892_v26 }
 0x258   : > { %v1524_v17 = vpop.f32.mrf.mxu2  ;;  %v1349_v22 = vpop.f32.mrf.mxu0 }
 0x259   : > { %v1525_v61 = vadd.f32 %v1524_v17, %v1436_v27  ;;  %v1613_v6 = vpop.f32.mrf.mxu3 }
 0x25a   : > { %v1438_v21 = vpop.f32.mrf.mxu1 }
 0x25b   : > { %v1614_v20 = vadd.f32 %v1613_v6, %v1525_v61  ;;  %v1439_v31 = vadd.f32 %v1438_v21, %v1349_v22 }
 0x25d   : > { %v1893_v23 = vpack.c.bf16 %v1614_v20, %v1614_v20 }
 0x25f   : > { %1925 = vst.msk [vmem:[#allocation4 + $0x44] sm:$0xf] %vm1683_vm0, %v1893_v23 }
 0x260   : > { %v1527_v5 = vpop.f32.mrf.mxu2  ;;  %v1351_v37 = vpop.f32.mrf.mxu0 }
 0x261   : > { %v1528_v28 = vadd.f32 %v1527_v5, %v1439_v31  ;;  %v1616_v62 = vpop.f32.mrf.mxu3 }
 0x262   : > { %v1440_v39 = vpop.f32.mrf.mxu1 }
 0x263   : > { %v1617_v38 = vadd.f32 %v1616_v62, %v1528_v28  ;;  %v1441_v56 = vadd.f32 %v1440_v39, %v1351_v37 }
 0x265   : > { %v1894_v12 = vpack.c.bf16 %v1617_v38, %v1617_v38 }
 0x267   : > { %1926 = vst.msk [vmem:[#allocation4 + $0x48] sm:$0xf] %vm1683_vm0, %v1894_v12 }
 0x268   : > { %v1529_v32 = vpop.f32.mrf.mxu2  ;;  %v1354_v33 = vpop.f32.mrf.mxu0 }
 0x269   : > { %v1530_v13 = vadd.f32 %v1529_v32, %v1441_v56  ;;  %v1618_v14 = vpop.f32.mrf.mxu3 }
 0x26a   : > { %v1443_v34 = vpop.f32.mrf.mxu1 }
 0x26b   : > { %v1619_v40 = vadd.f32 %v1618_v14, %v1530_v13  ;;  %v1444_v42 = vadd.f32 %v1443_v34, %v1354_v33 }
 0x26d   : > { %v1895_v35 = vpack.c.bf16 %v1619_v40, %v1619_v40  ;;  %v1940_v40 = vlaneseq }
 0x26f   : > { %1927 = vst.msk [vmem:[#allocation4 + $0x4c] sm:$0xf] %vm1683_vm0, %v1895_v35 }
 0x270   : > { %v1532_v43 = vpop.f32.mrf.mxu2  ;;  %v1356_v15 = vpop.f32.mrf.mxu0 }
 0x271   : > { %v1533_v49 = vadd.f32 %v1532_v43, %v1444_v42  ;;  %v1621_v57 = vpop.f32.mrf.mxu3  ;;  %v4568_v42 = vshrl.u32 %v1940_v40, 7 }
 0x272   : > { %v1445_v50 = vpop.f32.mrf.mxu1 }
 0x273   : > { %v1622_v47 = vadd.f32 %v1621_v57, %v1533_v49  ;;  %v1446_v55 = vadd.f32 %v1445_v50, %v1356_v15  ;;  %v4572_v57 = vadd.s32 8, %v4568_v42  ;;  %v4575_v15 = vadd.s32 16, %v4568_v42 }
 0x274   : > { %v4578_v50 = vadd.s32 24, %v4568_v42 }
 0x275   : > { %v1896_v54 = vpack.c.bf16 %v1622_v47, %v1622_v47 }
 0x277   : > { %1928 = vst.msk [vmem:[#allocation4 + $0x50] sm:$0xf] %vm1683_vm0, %v1896_v54  ;;  %v4581_v54 = vadd.s32 32, %v4568_v42 }
 0x278   : > { %v1534_v58 = vpop.f32.mrf.mxu2  ;;  %v1359_v52 = vpop.f32.mrf.mxu0 }
 0x279   : > { %v1535_v51 = vadd.f32 %v1534_v58, %v1446_v55  ;;  %v1623_v10 = vpop.f32.mrf.mxu3  ;;  %v4584_v55 = vadd.s32 40, %v4568_v42  ;;  %v4587_v58 = vadd.s32 48, %v4568_v42 }
 0x27a   : > { %v1448_v59 = vpop.f32.mrf.mxu1 }
 0x27b   : > { %v1624_v53 = vadd.f32 %v1623_v10, %v1535_v51  ;;  %v1449_v60 = vadd.f32 %v1448_v59, %v1359_v52  ;;  %v4590_v52 = vadd.s32 56, %v4568_v42  ;;  %v4596_v59 = vadd.s32 72, %v4568_v42 }
 0x27d   : > { %v1897_v44 = vpack.c.bf16 %v1624_v53, %v1624_v53  ;;  %v4593_v53 = vadd.s32 64, %v4568_v42 }
 0x27f   : > { %1929 = vst.msk [vmem:[#allocation4 + $0x54] sm:$0xf] %vm1683_vm0, %v1897_v44 }
 0x280   : > { %v1537_v41 = vpop.f32.mrf.mxu2  ;;  %v1361_v45 = vpop.f32.mrf.mxu0 }
 0x281   : > { %v1538_v16 = vadd.f32 %v1537_v41, %v1449_v60  ;;  %v1626_v63 = vpop.f32.mrf.mxu3  ;;  %v4599_v60 = vadd.s32 80, %v4568_v42  ;;  %v4602_v41 = vadd.s32 88, %v4568_v42 }
 0x282   : > { %v1450_v46 = vpop.f32.mrf.mxu1 }
 0x283   : > { %v1627_v4 = vadd.f32 %v1626_v63, %v1538_v16  ;;  %v1451_v7 = vadd.f32 %v1450_v46, %v1361_v45  ;;  %v4605_v16 = vadd.s32 96, %v4568_v42  ;;  %v4607_v63 = vand.u32 127, %v1940_v40 }
 0x284   : > { %v4610_v46 = vadd.s32 104, %v4568_v42 }
 0x285   : > { %v1898_v36 = vpack.c.bf16 %v1627_v4, %v1627_v4  ;;  %vm1960_vm2 = vcmp.le.s32.totalorder %v4607_v63, %v4572_v57  ;;  %vm1961_vm3 = vcmp.le.s32.totalorder %v4607_v63, %v4575_v15  ;;  %vm1962_vm4 = vcmp.le.s32.totalorder %v4607_v63, %v4578_v50 }
 0x286   : > { %vm1963_vm5 = vcmp.le.s32.totalorder %v4607_v63, %v4581_v54  ;;  %vm1964_vm6 = vcmp.le.s32.totalorder %v4607_v63, %v4584_v55  ;;  %vm1965_vm7 = vcmp.le.s32.totalorder %v4607_v63, %v4587_v58  ;;  %vm1966_vm8 = vcmp.le.s32.totalorder %v4607_v63, %v4590_v52 }
 0x287   : > { %1930 = vst.msk [vmem:[#allocation4 + $0x58] sm:$0xf] %vm1683_vm0, %v1898_v36  ;;  %v4613_v36 = vadd.s32 112, %v4568_v42  ;;  %vm1968_vm10 = vcmp.le.s32.totalorder %v4607_v63, %v4596_v59  ;;  %vm1969_vm11 = vcmp.le.s32.totalorder %v4607_v63, %v4599_v60  ;;  %vm1970_vm12 = vcmp.le.s32.totalorder %v4607_v63, %v4602_v41 }
 0x288   : > { %v1539_v9 = vpop.f32.mrf.mxu2  ;;  %v1364_v19 = vpop.f32.mrf.mxu0  ;;  %vm1971_vm13 = vcmp.le.s32.totalorder %v4607_v63, %v4605_v16  ;;  %vm1972_vm14 = vcmp.le.s32.totalorder %v4607_v63, %v4610_v46 }
 0x289   : > { %v1540_v48 = vadd.f32 %v1539_v9, %v1451_v7  ;;  %v1628_v30 = vpop.f32.mrf.mxu3  ;;  %v4616_v7 = vadd.s32 120, %v4568_v42  ;;  %vm1973_vm15 = vcmp.le.s32.totalorder %v4607_v63, %v4613_v36 }
 0x28a   : > { %v1453_v8 = vpop.f32.mrf.mxu1 }
 0x28b   : > { %v1629_v18 = vadd.f32 %v1628_v30, %v1540_v48  ;;  %v1454_v11 = vadd.f32 %v1453_v8, %v1364_v19 }
 0x28d   : > { %v1899_v24 = vpack.c.bf16 %v1629_v18, %v1629_v18 }
 0x28f   : > { %1931 = vst.msk [vmem:[#allocation4 + $0x5c] sm:$0xf] %vm1683_vm0, %v1899_v24 }
 0x290   : > { %v1542_v0 = vpop.f32.mrf.mxu2  ;;  %v1366_v1 = vpop.f32.mrf.mxu0 }
 0x291   : > { %v1543_v29 = vadd.f32 %v1542_v0, %v1454_v11  ;;  %v1631_v25 = vpop.f32.mrf.mxu3 }
 0x292   : > { %v1455_v3 = vpop.f32.mrf.mxu1 }
 0x293   : > { %v1632_v2 = vadd.f32 %v1631_v25, %v1543_v29  ;;  %v1456_v27 = vadd.f32 %v1455_v3, %v1366_v1 }
 0x295   : > { %v1900_v26 = vpack.c.bf16 %v1632_v2, %v1632_v2 }
 0x297   : > { %1932 = vst.msk [vmem:[#allocation4 + $0x60] sm:$0xf] %vm1683_vm0, %v1900_v26 }
 0x298   : > { %v1544_v17 = vpop.f32.mrf.mxu2  ;;  %v1369_v22 = vpop.f32.mrf.mxu0 }
 0x299   : > { %v1545_v61 = vadd.f32 %v1544_v17, %v1456_v27  ;;  %v1633_v6 = vpop.f32.mrf.mxu3 }
 0x29a   : > { %v1458_v21 = vpop.f32.mrf.mxu1 }
 0x29b   : > { %v1634_v20 = vadd.f32 %v1633_v6, %v1545_v61  ;;  %v1459_v31 = vadd.f32 %v1458_v21, %v1369_v22 }
 0x29d   : > { %v1901_v23 = vpack.c.bf16 %v1634_v20, %v1634_v20 }
 0x29f   : > { %1933 = vst.msk [vmem:[#allocation4 + $0x64] sm:$0xf] %vm1683_vm0, %v1901_v23 }
 0x2a0   : > { %v1547_v5 = vpop.f32.mrf.mxu2  ;;  %v1371_v37 = vpop.f32.mrf.mxu0 }
 0x2a1   : > { %v1548_v28 = vadd.f32 %v1547_v5, %v1459_v31  ;;  %v1636_v62 = vpop.f32.mrf.mxu3 }
 0x2a2   : > { %v1460_v39 = vpop.f32.mrf.mxu1 }
 0x2a3   : > { %v1637_v38 = vadd.f32 %v1636_v62, %v1548_v28  ;;  %v1461_v56 = vadd.f32 %v1460_v39, %v1371_v37 }
 0x2a5   : > { %v1902_v12 = vpack.c.bf16 %v1637_v38, %v1637_v38 }
 0x2a7   : > { %1934 = vst.msk [vmem:[#allocation4 + $0x68] sm:$0xf] %vm1683_vm0, %v1902_v12 }
 0x2a8   : > { %v1549_v32 = vpop.f32.mrf.mxu2  ;;  %v1374_v33 = vpop.f32.mrf.mxu0 }
 0x2a9   : > { %v1550_v13 = vadd.f32 %v1549_v32, %v1461_v56  ;;  %v1638_v14 = vpop.f32.mrf.mxu3 }
 0x2aa   : > { %v1463_v35 = vpop.f32.mrf.mxu1 }
 0x2ab   : > { %v1639_v34 = vadd.f32 %v1638_v14, %v1550_v13  ;;  %v1464_v49 = vadd.f32 %v1463_v35, %v1374_v33 }
 0x2ad   : > { %v1903_v43 = vpack.c.bf16 %v1639_v34, %v1639_v34 }
 0x2af   : > { %1935 = vst.msk [vmem:[#allocation4 + $0x6c] sm:$0xf] %vm1683_vm0, %v1903_v43 }
 0x2b0   : > { %v1552_v47 = vpop.f32.mrf.mxu2  ;;  %v1376_v44 = vpop.f32.mrf.mxu0 }
 0x2b1   : > { %v1553_v51 = vadd.f32 %v1552_v47, %v1464_v49  ;;  %v1641_v10 = vpop.f32.mrf.mxu3 }
 0x2b2   : > { %v1465_v4 = vpop.f32.mrf.mxu1 }
 0x2b3   : > { %v1642_v45 = vadd.f32 %v1641_v10, %v1553_v51  ;;  %v1466_v9 = vadd.f32 %v1465_v4, %v1376_v44 }
 0x2b5   : > { %v1904_v48 = vpack.c.bf16 %v1642_v45, %v1642_v45 }
 0x2b7   : > { %1936 = vst.msk [vmem:[#allocation4 + $0x70] sm:$0xf] %vm1683_vm0, %v1904_v48 }
 0x2b8   : > { %v1554_v30 = vpop.f32.mrf.mxu2  ;;  %v1379_v8 = vpop.f32.mrf.mxu0 }
 0x2b9   : > { %v1555_v19 = vadd.f32 %v1554_v30, %v1466_v9  ;;  %v1643_v18 = vpop.f32.mrf.mxu3 }
 0x2ba   : > { %v1468_v11 = vpop.f32.mrf.mxu1 }
 0x2bb   : > { %v1644_v24 = vadd.f32 %v1643_v18, %v1555_v19  ;;  %v1469_v29 = vadd.f32 %v1468_v11, %v1379_v8 }
 0x2bd   : > { %v1905_v0 = vpack.c.bf16 %v1644_v24, %v1644_v24 }
 0x2bf   : > { %1937 = vst.msk [vmem:[#allocation4 + $0x74] sm:$0xf] %vm1683_vm0, %v1905_v0 }
 0x2c0   : > { %v1557_v25 = vpop.f32.mrf.mxu2  ;;  %v1381_v26 = vpop.f32.mrf.mxu0 }
 0x2c1   : > { %v1558_v1 = vadd.f32 %v1557_v25, %v1469_v29  ;;  %v1646_v2 = vpop.f32.mrf.mxu3 }
 0x2c2   : > { %v1470_v27 = vpop.f32.mrf.mxu1 }
 0x2c3   : > { %v1647_v3 = vadd.f32 %v1646_v2, %v1558_v1  ;;  %v1471_v61 = vadd.f32 %v1470_v27, %v1381_v26 }
 0x2c5   : > { %v1906_v17 = vpack.c.bf16 %v1647_v3, %v1647_v3 }
 0x2c7   : > { %1938 = vst.msk [vmem:[#allocation4 + $0x78] sm:$0xf] %vm1683_vm0, %v1906_v17 }
 0x2c8   : > { %v1559_v6 = vpop.f32.mrf.mxu2 }
 0x2c9   : > { %v1560_v22 = vadd.f32 %v1559_v6, %v1471_v61  ;;  %v1648_v20 = vpop.f32.mrf.mxu3 }
 0x2cb   : > { %v1649_v21 = vadd.f32 %v1648_v20, %v1560_v22 }
 0x2cd   : > { %v1907_v23 = vpack.c.bf16 %v1649_v21, %v1649_v21 }
 0x2cf   : > { %1939 = vst.msk [vmem:[#allocation4 + $0x7c] sm:$0xf] %vm1683_vm0, %v1907_v23 }
 0x2d0 LB: >> { %s4660_s23 = sshll.u32 %s3575_s22, 6  ;;  %vm2116_vm9 = vcmask 523264   ;;  %vm4951_vm1 = vcmp.le.s32.totalorder %v4607_v63, %v4568_v42  ;;  %vm4952_vm0 = vcmp.le.s32.totalorder %v4607_v63, %v4616_v7  ;;  %s3212_s25 = sshll.u32 %s3575_s22, 7  ;;  %s3575_s22 = sphi %s4654_s22, %s1980_s22  }
 0x2d1   : >> { %s2001_s20 = scalar_lea.vmem [#allocation3], %s4660_s23  ;;  %s1983_s21 = scalar_lea.vmem [#allocation2], %s4660_s23 }
 0x2d2   : >> { %v3363_v31 = vld [vmem:[%s2001_s20 + $0x38] sm:$0xff]  ;;  %v3362_v28 = vld [vmem:[%s2001_s20 + $0x30] sm:$0xff]  ;;  %v3361_v37 = vld [vmem:[%s2001_s20 + $0x28] sm:$0xff]  ;;  %s4783_s24 = scalar_lea.vmem [#allocation4], %s4660_s23  ;;  %s4837_s26 = scalar_lea.vmem %s3675_s27, %s3212_s25 }
 0x2d3   : >> { %v2163_v5 = vsel %vm2116_vm9, %v3363_v31, 0  ;;  %v2160_v62 = vsel %vm2116_vm9, %v3362_v28, 0  ;;  %v2157_v38 = vsel %vm2116_vm9, %v3361_v37, 0  ;;  %v3360_v39 = vld [vmem:[%s2001_s20 + $0x20] sm:$0xff]  ;;  %v3359_v56 = vld [vmem:[%s2001_s20 + $0x18] sm:$0xff]  ;;  %v3358_v13 = vld [vmem:[%s2001_s20 + $0x10] sm:$0xff] }
 0x2d4   : >> { %2165 = vmatpush.bf16.xpose.msra.mxu0 %v2163_v5  ;;  %3373 = vmatpush.bf16.xpose.msra.mxu2 %v2163_v5  ;;  %v2154_v12 = vsel %vm2116_vm9, %v3360_v39, 0  ;;  %v2151_v32 = vsel %vm2116_vm9, %v3359_v56, 0  ;;  %v2148_v14 = vsel %vm2116_vm9, %v3358_v13, 0  ;;  %v3357_v33 = vld [vmem:[%s2001_s20 + $0x8] sm:$0xff]  ;;  %v3356_v34 = vld [vmem:[%s2001_s20] sm:$0xff]  ;;  %v3350_v49 = vld [vmem:[%s1983_s21 + $0x18] sm:$0xff] }
 0x2d5   : >> { %v2145_v40 = vsel %vm2116_vm9, %v3357_v33, 0  ;;  %v2142_v35 = vsel %vm2116_vm9, %v3356_v34, 0  ;;  %v3347_v43 = vld [vmem:[%s1983_s21] sm:$0xff]  ;;  %v3348_v47 = vld [vmem:[%s1983_s21 + $0x8] sm:$0xff]  ;;  %v3349_v10 = vld [vmem:[%s1983_s21 + $0x10] sm:$0xff]  ;;  %s1980_s22 = sadd.s32 1, %s3575_s22  }
 0x2d6   : >> { %v3351_v51 = vld [vmem:[%s1983_s21 + $0x20] sm:$0xff]  ;;  %v3352_v44 = vld [vmem:[%s1983_s21 + $0x28] sm:$0xff]  ;;  %v3353_v45 = vld [vmem:[%s1983_s21 + $0x30] sm:$0xff]  ;;  %p1977_p7 = scmp.ge.s32.totalorder %s1980_s22, 2  }
 0x2d7   : >> { %v3354_v4 = vld [vmem:[%s1983_s21 + $0x38] sm:$0xff] }
 0x2dc   : >> { %2166 = vmatpush.bf16.xpose.msra.mxu0 %v2160_v62  ;;  %3374 = vmatpush.bf16.xpose.msra.mxu2 %v2160_v62 }
 0x2e4   : >> { %2167 = vmatpush.bf16.xpose.msra.mxu0 %v2157_v38  ;;  %3375 = vmatpush.bf16.xpose.msra.mxu2 %v2157_v38 }
 0x2ec   : >> { %2168 = vmatpush.bf16.xpose.msra.mxu0 %v2154_v12  ;;  %3376 = vmatpush.bf16.xpose.msra.mxu2 %v2154_v12 }
 0x2f4   : >> { %2169 = vmatpush.bf16.xpose.msra.mxu0 %v2151_v32  ;;  %3377 = vmatpush.bf16.xpose.msra.mxu2 %v2151_v32 }
 0x2fc   : >> { %2170 = vmatpush.bf16.xpose.msra.mxu0 %v2148_v14  ;;  %3378 = vmatpush.bf16.xpose.msra.mxu2 %v2148_v14 }
 0x304   : >> { %2171 = vmatpush.bf16.xpose.msra.mxu0 %v2145_v40  ;;  %3379 = vmatpush.bf16.xpose.msra.mxu2 %v2145_v40 }
 0x30c   : >> { %2172 = vmatpush.bf16.xpose.msra.mxu0 %v2142_v35  ;;  %3380 = vmatpush.bf16.xpose.msra.mxu2 %v2142_v35 }
 0x313   : >> { %3172 = vmatmul.msk.bf16.vlgmr.msra.gmra.mxu0 %vm2116_vm9, %v3347_v43  ;;  %3175 = vmatmul.msk.bf16.vlgmr.msra.gmra.mxu2 %vm2116_vm9, %v3350_v49 }
 0x323   : >> { %3173 = vmatmul.msk.bf16.gmra.mxu0 %vm2116_vm9, %v3348_v47  ;;  %3176 = vmatmul.msk.bf16.gmra.mxu2 %vm2116_vm9, %v3351_v51 }
 0x333   : >> { %3174 = vmatmul.msk.bf16.gmra.mxu0 %vm2116_vm9, %v3349_v10  ;;  %3177 = vmatmul.msk.bf16.gmra.mxu2 %vm2116_vm9, %v3352_v44 }
 0x343   : >> { %3178 = vmatmul.msk.bf16.gmra.mxu2 %vm2116_vm9, %v3353_v45 }
 0x353   : >> { %3179 = vmatmul.msk.bf16.gmra.mxu2 %vm2116_vm9, %v3354_v4 }
 0x390   : >> { %v2174_v9 = vpop.f32.mrf.mxu0 }
 0x391   : >> { %v2214_v48 = vsel %vm4951_vm1, %v2174_v9, -inf  ;;  %vm4953_vm1 = vcmp.le.s32.totalorder %v4607_v63, %v4593_v53 }
 0x392   : >> { %2230 = vmax.xlane.f32.xlu0 %v2214_v48 }
 0x396   : >> { %v2189_v30 = vpop.f32.mrf.mxu2 }
 0x397   : >> { %v4709_v20 = vsel %vm1965_vm7, %v2189_v30, -inf }
 0x398   : >> { %v2176_v19 = vpop.f32.mrf.mxu0 }
 0x399   : >> { %v2215_v18 = vsel %vm1960_vm2, %v2176_v19, -inf }
 0x39a   : >> { %2232 = vmax.xlane.f32.xlu0 %v2215_v18 }
 0x39e   : >> { %v2191_v8 = vpop.f32.mrf.mxu2 }
 0x39f   : >> { %v4722_v31 = vsel %vm1966_vm8, %v2191_v8, -inf }
 0x3a0   : >> { %v2179_v24 = vpop.f32.mrf.mxu0 }
 0x3a1   : >> { %v2216_v11 = vsel %vm1961_vm3, %v2179_v24, -inf }
 0x3a2   : >> { %2234 = vmax.xlane.f32.xlu1 %v2216_v11 }
 0x3a6   : >> { %v2194_v0 = vpop.f32.mrf.mxu2 }
 0x3a7   : >> { %v4760_v4 = vsel %vm4953_vm1, %v2194_v0, -inf }
 0x3a8   : >> { %v2181_v29 = vpop.f32.mrf.mxu0 }
 0x3a9   : >> { %v2217_v25 = vsel %vm1962_vm4, %v2181_v29, -inf }
 0x3aa   : >> { %2236 = vmax.xlane.f32.xlu1 %v2217_v25 }
 0x3ae   : >> { %v2196_v1 = vpop.f32.mrf.mxu2 }
 0x3af   : >> { %v4740_v38 = vsel %vm1968_vm10, %v2196_v1, -inf }
 0x3b0   : >> { %v2184_v2 = vpop.f32.mrf.mxu0 }
 0x3b1   : >> { %v2218_v3 = vsel %vm1963_vm5, %v2184_v2, -inf }
 0x3b2   : >> { %2238 = vmax.xlane.f32.xlu0 %v2218_v3 }
 0x3b6   : >> { %v2199_v26 = vpop.f32.mrf.mxu2 }
 0x3b7   : >> { %v2224_v27 = vsel %vm1969_vm11, %v2199_v26, -inf }
 0x3b8   : >> { %2250 = vmax.xlane.f32.xlu2 %v2224_v27  ;;  %v2186_v17 = vpop.f32.mrf.mxu0 }
 0x3b9   : >> { %v2219_v61 = vsel %vm1964_vm6, %v2186_v17, -inf }
 0x3ba   : >> { %2240 = vmax.xlane.f32.xlu1 %v2219_v61 }
 0x3be   : >> { %v2201_v6 = vpop.f32.mrf.mxu2 }
 0x3bf   : >> { %v4704_v22 = vsel %vm1970_vm12, %v2201_v6, -inf }
 0x3c0   : >> { %2252 = vmax.xlane.f32.xlu2 %v4704_v22 }
 0x3c2   : >> { %2242 = vmax.xlane.f32.xlu1 %v4709_v20 }
 0x3c6   : >> { %v2204_v21 = vpop.f32.mrf.mxu2 }
 0x3c7   : >> { %v4716_v23 = vsel %vm1971_vm13, %v2204_v21, -inf }
 0x3c8   : >> { %2254 = vmax.xlane.f32.xlu2 %v4716_v23 }
 0x3ce   : >> { %v2206_v5 = vpop.f32.mrf.mxu2 }
 0x3cf   : >> { %v4727_v28 = vsel %vm1972_vm14, %v2206_v5, -inf }
 0x3d0   : >> { %2244 = vmax.xlane.f32.xlu2 %v4722_v31  ;;  %2256 = vmax.xlane.f32.xlu0 %v4727_v28 }
 0x3d6   : >> { %v2209_v62 = vpop.f32.mrf.mxu2 }
 0x3d7   : >> { %v4734_v37 = vsel %vm1973_vm15, %v2209_v62, -inf }
 0x3d8   : >> { %2258 = vmax.xlane.f32.xlu2 %v4734_v37 }
 0x3de   : >> { %v2211_v40 = vpop.f32.mrf.mxu2 }
 0x3df   : >> { %v4751_v49 = vsel %vm4952_vm0, %v2211_v40, -inf }
 0x3e0   : >> { %2248 = vmax.xlane.f32.xlu2 %v4740_v38 }
 0x405   : >> { %v2231_v39 = vpop.xlane.xlu0 %2230 }
 0x406   : >> { %v2262_v12 = vsub.f32 %v2214_v48, %v2231_v39  ;;  %v3371_v39 = vld [vmem:[%s4783_s24 + $0x30] sm:$0xff] }
 0x408   : >> { %v2278_v56 = vmul.f32 1.442695, %v2262_v12 }
 0x40a   : >> { %3439 = vpow2.f32 %v2278_v56 }
 0x40d   : >> { %v2233_v32 = vpop.xlane.xlu0 %2232 }
 0x40e   : >> { %v2263_v13 = vsub.f32 %v2215_v18, %v2233_v32 }
 0x410   : >> { %v4743_v14 = vpop.eup %3439  ;;  %v2280_v33 = vmul.f32 1.442695, %v2263_v13 }
 0x411   : >> { %2310 = vadd.xlane.f32.xlu0 %v4743_v14 }
 0x412   : >> { %3441 = vpow2.f32 %v2280_v33 }
 0x415   : >> { %v2235_v34 = vpop.xlane.xlu1 %2234 }
 0x416   : >> { %v2264_v35 = vsub.f32 %v2216_v11, %v2235_v34 }
 0x418   : >> { %v4746_v43 = vpop.eup %3441  ;;  %v2282_v47 = vmul.f32 1.442695, %v2264_v35  ;;  %v3370_v35 = vld [vmem:[%s4783_s24 + $0x28] sm:$0xff] }
 0x419   : >> { %2260 = vmax.xlane.f32.xlu0 %v4751_v49  ;;  %2312 = vadd.xlane.f32.xlu1 %v4746_v43 }
 0x41a   : >> { %3443 = vpow2.f32 %v2282_v47 }
 0x41d   : >> { %v2237_v51 = vpop.xlane.xlu1 %2236 }
 0x41e   : >> { %v2265_v10 = vsub.f32 %v2217_v25, %v2237_v51 }
 0x420   : >> { %v4755_v44 = vpop.eup %3443  ;;  %v2284_v45 = vmul.f32 1.442695, %v2265_v10 }
 0x421   : >> { %2314 = vadd.xlane.f32.xlu0 %v4755_v44  ;;  %2246 = vmax.xlane.f32.xlu1 %v4760_v4 }
 0x422   : >> { %3445 = vpow2.f32 %v2284_v45 }
 0x425   : >> { %v2239_v9 = vpop.xlane.xlu0 %2238 }
 0x426   : >> { %v2266_v48 = vsub.f32 %v2218_v3, %v2239_v9 }
 0x428   : >> { %v4764_v30 = vpop.eup %3445  ;;  %v2286_v19 = vmul.f32 1.442695, %v2266_v48 }
 0x429   : >> { %2316 = vadd.xlane.f32.xlu1 %v4764_v30 }
 0x42a   : >> { %3447 = vpow2.f32 %v2286_v19 }
 0x42b   : >> { %v2251_v18 = vpop.xlane.xlu2 %2250 }
 0x42c   : >> { %v2272_v8 = vsub.f32 %v2224_v27, %v2251_v18  ;;  %v3369_v18 = vld [vmem:[%s4783_s24 + $0x20] sm:$0xff] }
 0x42d   : >> { %v2241_v24 = vpop.xlane.xlu1 %2240 }
 0x42e   : >> { %v2298_v11 = vmul.f32 1.442695, %v2272_v8  ;;  %v2267_v29 = vsub.f32 %v2219_v61, %v2241_v24  ;;  %v3368_v8 = vld [vmem:[%s4783_s24 + $0x18] sm:$0xff]  ;;  %v3367_v24 = vld [vmem:[%s4783_s24 + $0x10] sm:$0xff] }
 0x430   : >> { %v4767_v0 = vpop.eup %3447  ;;  %3449 = vpow2.f32 %v2298_v11  ;;  %v2288_v25 = vmul.f32 1.442695, %v2267_v29  ;;  %v3365_v11 = vld [vmem:[%s4783_s24] sm:$0xff] }
 0x431   : >> { %2318 = vadd.xlane.f32.xlu1 %v4767_v0 }
 0x432   : >> { %3451 = vpow2.f32 %v2288_v25 }
 0x433   : >> { %v2253_v1 = vpop.xlane.xlu2 %2252 }
 0x434   : >> { %v2273_v2 = vsub.f32 %v4704_v22, %v2253_v1 }
 0x435   : >> { %v2243_v3 = vpop.xlane.xlu1 %2242 }
 0x436   : >> { %v4771_v26 = vpop.eup %3449  ;;  %v2300_v17 = vmul.f32 1.442695, %v2273_v2  ;;  %v2268_v27 = vsub.f32 %v4709_v20, %v2243_v3  ;;  %v3372_v20 = vld [vmem:[%s4783_s24 + $0x38] sm:$0xff] }
 0x437   : >> { %2330 = vadd.xlane.f32.xlu2 %v4771_v26  ;;  %2430 = vmatpush.bf16.msra.mxu1 %v3372_v20 }
 0x438   : >> { %3453 = vpow2.f32 %v2300_v17  ;;  %v2290_v61 = vmul.f32 1.442695, %v2268_v27  ;;  %v4776_v5 = vpop.eup %3451  ;;  %3381 = vmatpush.bf16.msra.mxu3 %v3372_v20 }
 0x43a   : >> { %3455 = vpow2.f32 %v2290_v61 }
 0x43b   : >> { %v2255_v6 = vpop.xlane.xlu2 %2254  ;;  %2431 = vmatpush.bf16.msra.mxu1 %v3371_v39 }
 0x43c   : >> { %v2274_v21 = vsub.f32 %v4716_v23, %v2255_v6  ;;  %3382 = vmatpush.bf16.msra.mxu3 %v3371_v39 }
 0x43e   : >> { %v4778_v62 = vpop.eup %3453  ;;  %v2302_v22 = vmul.f32 1.442695, %v2274_v21 }
 0x43f   : >> { %2332 = vadd.xlane.f32.xlu0 %v4778_v62  ;;  %2320 = vadd.xlane.f32.xlu2 %v4776_v5 }
 0x440   : >> { %3457 = vpow2.f32 %v2302_v22  ;;  %v4789_v13 = vpop.eup %3455  ;;  %2432 = vmatpush.bf16.msra.mxu1 %v3370_v35  ;;  %3383 = vmatpush.bf16.msra.mxu3 %v3370_v35 }
 0x443   : >> { %v2245_v23 = vpop.xlane.xlu2 %2244  ;;  %v2257_v12 = vpop.xlane.xlu0 %2256 }
 0x444   : >> { %v2269_v56 = vsub.f32 %v4722_v31, %v2245_v23  ;;  %v2275_v32 = vsub.f32 %v4727_v28, %v2257_v12  ;;  %2433 = vmatpush.bf16.msra.mxu1 %v3369_v18  ;;  %3384 = vmatpush.bf16.msra.mxu3 %v3369_v18 }
 0x446   : >> { %v4791_v33 = vpop.eup %3457  ;;  %v2292_v40 = vmul.f32 1.442695, %v2269_v56  ;;  %v2304_v34 = vmul.f32 1.442695, %v2275_v32 }
 0x447   : >> { %2334 = vadd.xlane.f32.xlu0 %v4791_v33  ;;  %2322 = vadd.xlane.f32.xlu2 %v4789_v13 }
 0x448   : >> { %3459 = vpow2.f32 %v2292_v40  ;;  %2434 = vmatpush.bf16.msra.mxu1 %v3368_v8  ;;  %3385 = vmatpush.bf16.msra.mxu3 %v3368_v8 }
 0x449   : >> { %3461 = vpow2.f32 %v2304_v34 }
 0x44b   : >> { %v2259_v31 = vpop.xlane.xlu2 %2258 }
 0x44c   : >> { %v2276_v28 = vsub.f32 %v4734_v37, %v2259_v31  ;;  %2435 = vmatpush.bf16.msra.mxu1 %v3367_v24  ;;  %3386 = vmatpush.bf16.msra.mxu3 %v3367_v24 }
 0x44e   : >> { %v4797_v47 = vpop.eup %3459  ;;  %v2306_v51 = vmul.f32 1.442695, %v2276_v28 }
 0x44f   : >> { %v4799_v10 = vpop.eup %3461  ;;  %2324 = vadd.xlane.f32.xlu0 %v4797_v47 }
 0x450   : >> { %3463 = vpow2.f32 %v2306_v51  ;;  %2336 = vadd.xlane.f32.xlu1 %v4799_v10 }
 0x453   : >> { %v2249_v45 = vpop.xlane.xlu2 %2248 }
 0x454   : >> { %v2271_v9 = vsub.f32 %v4740_v38, %v2249_v45  ;;  %v3366_v38 = vld [vmem:[%s4783_s24 + $0x8] sm:$0xff] }
 0x455   : >> { %2436 = vmatpush.bf16.msra.mxu1 %v3366_v38  ;;  %3387 = vmatpush.bf16.msra.mxu3 %v3366_v38 }
 0x456   : >> { %v4804_v48 = vpop.eup %3463  ;;  %v2296_v19 = vmul.f32 1.442695, %v2271_v9 }
 0x458   : >> { %3465 = vpow2.f32 %v2296_v19  ;;  %2338 = vadd.xlane.f32.xlu1 %v4804_v48 }
 0x459   : >> { %2437 = vmatpush.bf16.msra.mxu1 %v3365_v11  ;;  %3388 = vmatpush.bf16.msra.mxu3 %v3365_v11 }
 0x45e   : >> { %v4807_v37 = vpop.eup %3465 }
 0x460   : >> { %2328 = vadd.xlane.f32.xlu1 %v4807_v37 }
 0x484   : >> { %v2311_v29 = vpop.xlane.xlu0 %2310 }
 0x485   : >> { %3467 = vrcp.f32 %v2311_v29 }
 0x48b   : >> { %v3468_v17 = vpop.eup %3467 }
 0x48c   : >> { %v2261_v25 = vpop.xlane.xlu0 %2260  ;;  %v2313_v1 = vpop.xlane.xlu1 %2312  ;;  %v2358_v6 = vmul.f32 %v3468_v17, %v4743_v14 }
 0x48d   : >> { %v2277_v2 = vsub.f32 %v4751_v49, %v2261_v25  ;;  %3469 = vrcp.f32 %v2313_v1 }
 0x48f   : >> { %v2308_v3 = vmul.f32 1.442695, %v2277_v2 }
 0x491   : >> { %3471 = vpow2.f32 %v2308_v3 }
 0x493   : >> { %v3470_v27 = vpop.eup %3469 }
 0x494   : >> { %v2247_v61 = vpop.xlane.xlu1 %2246  ;;  %v2359_v21 = vmul.f32 %v3470_v27, %v4746_v43  ;;  %v2315_v12 = vpop.xlane.xlu0 %2314 }
 0x495   : >> { %v2270_v22 = vsub.f32 %v4760_v4, %v2247_v61 }
 0x496   : >> { %v2374_v20 = vpack.c.bf16 %v2359_v21, %v2358_v6 }
 0x497   : >> { %v4819_v39 = vpop.eup %3471  ;;  %v2294_v23 = vmul.f32 1.442695, %v2270_v22 }
 0x498   : >> { %2340 = vadd.xlane.f32.xlu2 %v4819_v39  ;;  %2438 = vmatmul.bf16.vlgmr.msra.gmra.mxu1 %v2374_v20 }
 0x499   : >> { %3473 = vpow2.f32 %v2294_v23 }
 0x49a   : >> { %3475 = vrcp.f32 %v2315_v12 }
 0x49c   : >> { %v2317_v49 = vpop.xlane.xlu1 %2316 }
 0x49d   : >> { %3477 = vrcp.f32 %v2317_v49 }
 0x49f   : >> { %v4822_v56 = vpop.eup %3473 }
 0x4a0   : >> { %2326 = vadd.xlane.f32.xlu0 %v4822_v56  ;;  %v3476_v14 = vpop.eup %3475 }
 0x4a1   : >> { %v2360_v4 = vmul.f32 %v3476_v14, %v4755_v44 }
 0x4a3   : >> { %v3478_v43 = vpop.eup %3477 }
 0x4a4   : >> { %v2361_v32 = vmul.f32 %v3478_v43, %v4764_v30  ;;  %v2319_v35 = vpop.xlane.xlu1 %2318 }
 0x4a6   : >> { %v2375_v40 = vpack.c.bf16 %v2361_v32, %v2360_v4 }
 0x4a8   : >> { %2443 = vmatmul.bf16.gmra.mxu1 %v2375_v40 }
 0x4aa   : >> { %v2331_v34 = vpop.xlane.xlu2 %2330 }
 0x4ab   : >> { %3479 = vrcp.f32 %v2331_v34 }
 0x4ac   : >> { %3481 = vrcp.f32 %v2319_v35 }
 0x4b1   : >> { %v3480_v51 = vpop.eup %3479 }
 0x4b2   : >> { %v2333_v31 = vpop.xlane.xlu0 %2332  ;;  %v2321_v28 = vpop.xlane.xlu2 %2320  ;;  %v2368_v8 = vmul.f32 %v3480_v51, %v4771_v26 }
 0x4b3   : >> { %3483 = vrcp.f32 %v2333_v31  ;;  %v3482_v45 = vpop.eup %3481 }
 0x4b4   : >> { %3485 = vrcp.f32 %v2321_v28  ;;  %v2362_v30 = vmul.f32 %v3482_v45, %v4767_v0 }
 0x4b9   : >> { %v3484_v9 = vpop.eup %3483 }
 0x4ba   : >> { %v3486_v19 = vpop.eup %3485  ;;  %v2335_v18 = vpop.xlane.xlu0 %2334  ;;  %v2369_v44 = vmul.f32 %v3484_v9, %v4778_v62 }
 0x4bb   : >> { %v2363_v24 = vmul.f32 %v3486_v19, %v4776_v5  ;;  %v2323_v29 = vpop.xlane.xlu2 %2322 }
 0x4bc   : >> { %v2379_v38 = vpack.c.bf16 %v2369_v44, %v2368_v8  ;;  %3487 = vrcp.f32 %v2323_v29 }
 0x4bd   : >> { %v2376_v11 = vpack.c.bf16 %v2363_v24, %v2362_v30  ;;  %3489 = vrcp.f32 %v2335_v18 }
 0x4be   : >> { %2463 = vmatmul.bf16.vlgmr.msra.gmra.mxu3 %v2379_v38 }
 0x4bf   : >> { %2448 = vmatmul.bf16.gmra.mxu1 %v2376_v11 }
 0x4c2   : >> { %v2325_v25 = vpop.xlane.xlu0 %2324  ;;  %v3488_v2 = vpop.eup %3487 }
 0x4c3   : >> { %3491 = vrcp.f32 %v2325_v25  ;;  %v2337_v1 = vpop.xlane.xlu1 %2336  ;;  %v3490_v3 = vpop.eup %3489  ;;  %v2364_v0 = vmul.f32 %v3488_v2, %v4789_v13 }
 0x4c4   : >> { %3493 = vrcp.f32 %v2337_v1  ;;  %v2370_v17 = vmul.f32 %v3490_v3, %v4791_v33 }
 0x4c9   : >> { %v3492_v26 = vpop.eup %3491 }
 0x4ca   : >> { %v3494_v62 = vpop.eup %3493  ;;  %v2365_v5 = vmul.f32 %v3492_v26, %v4797_v47 }
 0x4cb   : >> { %v2371_v27 = vmul.f32 %v3494_v62, %v4799_v10  ;;  %v2339_v21 = vpop.xlane.xlu1 %2338 }
 0x4cc   : >> { %v2377_v61 = vpack.c.bf16 %v2365_v5, %v2364_v0  ;;  %3495 = vrcp.f32 %v2339_v21 }
 0x4cd   : >> { %v2380_v6 = vpack.c.bf16 %v2371_v27, %v2370_v17 }
 0x4cf   : >> { %2453 = vmatmul.bf16.gmra.mxu1 %v2377_v61  ;;  %2468 = vmatmul.bf16.gmra.mxu3 %v2380_v6 }
 0x4d2   : >> { %v3496_v23 = vpop.eup %3495 }
 0x4d3   : >> { %v2329_v20 = vpop.xlane.xlu1 %2328  ;;  %v2372_v33 = vmul.f32 %v3496_v23, %v4804_v48 }
 0x50b   : >> { %v2341_v22 = vpop.xlane.xlu2 %2340 }
 0x50c   : >> { %3497 = vrcp.f32 %v2341_v22 }
 0x50d   : >> { %3499 = vrcp.f32 %v2329_v20 }
 0x512   : >> { %v3498_v12 = vpop.eup %3497 }
 0x513   : >> { %v2327_v13 = vpop.xlane.xlu0 %2326  ;;  %v2373_v47 = vmul.f32 %v3498_v12, %v4819_v39  ;;  %v3500_v14 = vpop.eup %3499 }
 0x514   : >> { %3501 = vrcp.f32 %v2327_v13  ;;  %v2367_v32 = vmul.f32 %v3500_v14, %v4807_v37 }
 0x515   : >> { %v2439_v10 = vpop.f32.mrf.mxu1  ;;  %v2381_v49 = vpack.c.bf16 %v2373_v47, %v2372_v33 }
 0x516   : >> { %2481 = vst.msk [vmem:[%s4837_s26] sm:$0xff] %vm2116_vm9, %v2439_v10 }
 0x517   : >> { %2473 = vmatmul.bf16.gmra.mxu3 %v2381_v49 }
 0x51a   : >> { %v3502_v43 = vpop.eup %3501 }
 0x51b   : >> { %v2366_v4 = vmul.f32 %v3502_v43, %v4822_v56 }
 0x51d   : >> { %v2441_v48 = vpop.f32.mrf.mxu1  ;;  %v2378_v40 = vpack.c.bf16 %v2367_v32, %v2366_v4 }
 0x51e   : >> { %2482 = vst.msk [vmem:[%s4837_s26 + $0x8] sm:$0xff] %vm2116_vm9, %v2441_v48 }
 0x51f   : >> { %2458 = vmatmul.bf16.gmra.mxu1 %v2378_v40 }
 0x525   : >> { %v2444_v39 = vpop.f32.mrf.mxu1 }
 0x526   : >> { %2483 = vst.msk [vmem:[%s4837_s26 + $0x10] sm:$0xff] %vm2116_vm9, %v2444_v39 }
 0x52d   : >> { %v2446_v34 = vpop.f32.mrf.mxu1 }
 0x52e   : >> { %2484 = vst.msk [vmem:[%s4837_s26 + $0x18] sm:$0xff] %vm2116_vm9, %v2446_v34 }
 0x53c   : >> { %v2449_v35 = vpop.f32.mrf.mxu1 }
 0x53d   : >> { %2485 = vst.msk [vmem:[%s4837_s26 + $0x20] sm:$0xff] %vm2116_vm9, %v2449_v35 }
 0x541   : >> { %v2464_v37 = vpop.f32.mrf.mxu3 }
 0x542   : >> { %2491 = vst.msk [vmem:[%s4837_s26 + $0x50] sm:$0xff] %vm2116_vm9, %v2464_v37 }
 0x544   : >> { %v2451_v56 = vpop.f32.mrf.mxu1 }
 0x545   : >> { %2486 = vst.msk [vmem:[%s4837_s26 + $0x28] sm:$0xff] %vm2116_vm9, %v2451_v56 }
 0x549   : >> { %v2466_v31 = vpop.f32.mrf.mxu3 }
 0x54a   : >> { %2492 = vst.msk [vmem:[%s4837_s26 + $0x58] sm:$0xff] %vm2116_vm9, %v2466_v31 }
 0x54c   : >> { %v2454_v28 = vpop.f32.mrf.mxu1 }
 0x54d   : >> { %2487 = vst.msk [vmem:[%s4837_s26 + $0x30] sm:$0xff] %vm2116_vm9, %v2454_v28 }
 0x552   : >> { %v2469_v51 = vpop.f32.mrf.mxu3 }
 0x553   : >> { %2493 = vst.msk [vmem:[%s4837_s26 + $0x60] sm:$0xff] %vm2116_vm9, %v2469_v51 }
 0x554   : >> { %v2456_v45 = vpop.f32.mrf.mxu1 }
 0x555   : >> { %2488 = vst.msk [vmem:[%s4837_s26 + $0x38] sm:$0xff] %vm2116_vm9, %v2456_v45 }
 0x55a   : >> { %v2471_v9 = vpop.f32.mrf.mxu3 }
 0x55b   : >> { %2494 = vst.msk [vmem:[%s4837_s26 + $0x68] sm:$0xff] %vm2116_vm9, %v2471_v9 }
 0x59a   : >> { %v2474_v19 = vpop.f32.mrf.mxu3 }
 0x59b   : >> { %2495 = vst.msk [vmem:[%s4837_s26 + $0x70] sm:$0xff] %vm2116_vm9, %v2474_v19 }
 0x59c   : >> { %v2459_v18 = vpop.f32.mrf.mxu1 }
 0x59d   : >> { %2489 = vst.msk [vmem:[%s4837_s26 + $0x40] sm:$0xff] %vm2116_vm9, %v2459_v18 }
 0x5a1   : > { %1979 = sbr.rel (!%p1977_p7) target bundleno = 720 (0x2d0), region = 79 }
 0x5a2   : >> { %v2476_v8 = vpop.f32.mrf.mxu3 }
 0x5a3   : >> { %2496 = vst.msk [vmem:[%s4837_s26 + $0x78] sm:$0xff] %vm2116_vm9, %v2476_v8 }
 0x5a4   : >> { %v2461_v44 = vpop.f32.mrf.mxu1 }
 0x5a5   : >> { %2490 = vst.msk [vmem:[%s4837_s26 + $0x48] sm:$0xff] %vm2116_vm9, %v2461_v44 }
 0x5a6 PF: > { %p12_p8 = scmp.ge.s32.totalorder %s3615_s14, 4   ;;  %s4954_s9 = smov %s3563_s10 }
 0x5a7   : > { %s4955_s10 = smov %s3567_s11  ;;  %s4956_s11 = smov %s3625_s17 }
 0x5a8   : > { %s4957_s12 = smov %s3615_s14  ;;  %14 = sbr.rel (!%p12_p8) target bundleno = 3 (0x3), region = 90 }
 0x5ad   :  { %2521 = vsyncpa [#allocation6], 1 }
 0x5ae   :  { %2523 = vsyncpa [#allocation6 + $0x1], 1 }

</bundles_post_ra>
